<compile_context>
chip_gen: v5e
topology: v5e:2x2
jax: 0.10.0
libtpu: 0.0.40
codegen_flags: <defaults>
</compile_context>

<pallas_src>
import jax
import jax.numpy as jnp
from jax import lax
from jax.experimental import pallas as pl
from jax.experimental.pallas import tpu as pltpu

IN_F, H1, H2, OUT_F = 57, 20, 10, 2


def _round_up(n, m):
    return ((n + m - 1) // m) * m


def _choose_tb(B, cap=8192):
    """Batch tile: as large as the scoped-VMEM budget comfortably allows, but
    with >= 2 grid steps whenever there is enough work (megacore), and always a
    sublane/lane-friendly multiple."""
    if B <= 256:
        return _round_up(max(B, 8), 8)          # single small step
    return min(cap, _round_up(pl.cdiv(B, 2), 128))


def _make_kernel(return_hidden: bool):
    """Kernel computing the 3-layer MLP on a (tb, 57) batch tile, writing the
    activations in their natural (batch, features) layouts."""

    def _compute(x_ref, w1_ref, b1_ref, w2_ref, b2_ref, w3_ref, b3_ref):
        x = x_ref[...]                                        # (tb, 57)
        # Linear(57->20): contract x's last dim with W1's last dim (x @ W1^T).
        h1 = lax.dot_general(x, w1_ref[...], (((1,), (1,)), ((), ())),
                             preferred_element_type=jnp.float32)
        h1 = jnp.maximum(h1 + b1_ref[...], 0.0)               # (tb, 20)
        # Linear(20->10) + ReLU.
        h2 = lax.dot_general(h1, w2_ref[...], (((1,), (1,)), ((), ())),
                             preferred_element_type=jnp.float32)
        h2 = jnp.maximum(h2 + b2_ref[...], 0.0)               # (tb, 10)
        # Linear(10->2) + Sigmoid.
        logits = lax.dot_general(h2, w3_ref[...], (((1,), (1,)), ((), ())),
                                 preferred_element_type=jnp.float32)
        y = jax.nn.sigmoid(logits + b3_ref[...])              # (tb, 2)
        return h1, h2, y

    if return_hidden:
        def kernel(x_ref, w1_ref, b1_ref, w2_ref, b2_ref, w3_ref, b3_ref,
                   fc1_ref, fc2_ref, out_ref):
            h1, h2, y = _compute(x_ref, w1_ref, b1_ref, w2_ref, b2_ref,
                                 w3_ref, b3_ref)
            fc1_ref[...] = h1
            fc2_ref[...] = h2
            out_ref[...] = y
    else:
        def kernel(x_ref, w1_ref, b1_ref, w2_ref, b2_ref, w3_ref, b3_ref,
                   out_ref):
            _, _, y = _compute(x_ref, w1_ref, b1_ref, w2_ref, b2_ref,
                               w3_ref, b3_ref)
            out_ref[...] = y

    return kernel


def mlp_forward(x, params, *, tb=None, return_hidden=True, stream_dtype=None):
    """x: (B, 57). params: PyTorch-layout weights (out, in), biases (1, out).

    Returns (fc1, fc2, out) with PyTorch shapes (B, 20), (B, 10), (B, 2),
    or just `out` when return_hidden=False.
    """
    B, in_f = x.shape
    assert in_f == IN_F
    x = x.astype(jnp.float32)                       # mirrors x.float() in PyTorch

    w1, b1 = params["w1"], params["b1"]
    w2, b2 = params["w2"], params["b2"]
    w3, b3 = params["w3"], params["b3"]
    if stream_dtype is not None:
        # Optional bandwidth saver: stream x/weights narrow, accumulate in f32.
        x = x.astype(stream_dtype)
        w1, w2, w3 = (w.astype(stream_dtype) for w in (w1, w2, w3))

    if tb is None:
        tb = _choose_tb(B)
    assert tb % 8 == 0
    grid_len = int(pl.cdiv(B, tb))

    def act_spec(cols):
        # Batch-tiled natural-layout block.  (If a profile ever shows exposed
        # DMA at step boundaries, add pipeline_mode=pl.Buffered(3) on x here.)
        return pl.BlockSpec((tb, cols), lambda i: (i, 0))

    def full_spec(shape):
        # Constant index_map -> stays VMEM-resident across grid steps.
        return pl.BlockSpec(shape, lambda i: (0, 0))

    out_shape = [jax.ShapeDtypeStruct((B, OUT_F), jnp.float32)]
    out_specs = [act_spec(OUT_F)]
    if return_hidden:
        out_shape = [jax.ShapeDtypeStruct((B, H1), jnp.float32),
                     jax.ShapeDtypeStruct((B, H2), jnp.float32)] + out_shape
        out_specs = [act_spec(H1), act_spec(H2)] + out_specs

    act_feats = (H1 + H2 if return_hidden else 0) + OUT_F
    cost = pl.CostEstimate(
        flops=2 * B * (IN_F * H1 + H1 * H2 + H2 * OUT_F),
        transcendentals=B * OUT_F,
        bytes_accessed=(x.dtype.itemsize * B * IN_F
                        + 4 * B * act_feats
                        + w1.dtype.itemsize * (H1 * IN_F + H2 * H1 + OUT_F * H2)
                        + 4 * (H1 + H2 + OUT_F)),
    )

    outs = pl.pallas_call(
        _make_kernel(return_hidden),
        out_shape=tuple(out_shape),
        grid_spec=pltpu.PrefetchScalarGridSpec(
            num_scalar_prefetch=0,
            grid=(grid_len,),
            in_specs=[
                act_spec(IN_F),               # x   (tb, 57) natural layout
                full_spec((H1, IN_F)),        # w1  (20, 57)
                full_spec((1, H1)),           # b1  (1, 20)
                full_spec((H2, H1)),          # w2  (10, 20)
                full_spec((1, H2)),           # b2  (1, 10)
                full_spec((OUT_F, H2)),       # w3  (2, 10)
                full_spec((1, OUT_F)),        # b3  (1, 2)
            ],
            out_specs=tuple(out_specs),
        ),
        compiler_params=pltpu.CompilerParams(
            dimension_semantics=("parallel",),
            vmem_limit_bytes=40 * 1024 * 1024),
        cost_estimate=cost,
    )(x, w1, b1, w2, b2, w3, b3)

    if return_hidden:
        fc1, fc2, out = outs
        return fc1, fc2, out
    (out,) = outs
    return out


def init_params(key):
    """Deterministic init mimicking nn.Linear's U(-1/sqrt(fan_in), 1/sqrt(fan_in)).
    Weights are PyTorch-native (out_features, in_features); biases are (1, out)."""
    ks = jax.random.split(key, 6)

    def lin(kw, kb, fan_in, fan_out):
        bound = 1.0 / jnp.sqrt(fan_in)
        w = jax.random.uniform(kw, (fan_out, fan_in), jnp.float32, -bound, bound)
        b = jax.random.uniform(kb, (1, fan_out), jnp.float32, -bound, bound)
        return w, b

    w1, b1 = lin(ks[0], ks[1], IN_F, H1)
    w2, b2 = lin(ks[2], ks[3], H1, H2)
    w3, b3 = lin(ks[4], ks[5], H2, OUT_F)
    return dict(w1=w1, b1=b1, w2=w2, b2=b2, w3=w3, b3=b3)


def reference_forward(x, p):
    """Plain-JAX reference replicating the PyTorch forward exactly."""
    x = x.astype(jnp.float32)
    fc1 = jnp.maximum(x @ p["w1"].T + p["b1"], 0.0)
    fc2 = jnp.maximum(fc1 @ p["w2"].T + p["b2"], 0.0)
    out = jax.nn.sigmoid(fc2 @ p["w3"].T + p["b3"])
    return fc1, fc2, out


if __name__ == "__main__":
    key = jax.random.PRNGKey(0)
    kx, kp = jax.random.split(key)

    # B is deliberately NOT a multiple of the batch tile: _choose_tb picks
    # tb=256 -> grid=(2,) (both TensorCores get work on megacore parts) and the
    # final block is ragged, exercising the no-pad masked-boundary-store path.
    B = 333
    x = jax.random.normal(kx, (B, IN_F), dtype=jnp.float32)
    params = init_params(kp)

    fc1, fc2, out = mlp_forward(x, params)
    jax.block_until_ready((fc1, fc2, out))

    r1, r2, ro = reference_forward(x, params)
    assert fc1.shape == (B, H1) and fc2.shape == (B, H2) and out.shape == (B, OUT_F)
    assert jnp.allclose(fc1, r1, atol=1e-5, rtol=1e-5)
    assert jnp.allclose(fc2, r2, atol=1e-5, rtol=1e-5)
    assert jnp.allclose(out, ro, atol=1e-5, rtol=1e-5)

    print("KERNEL_OK")
</pallas_src>

<mosaic_0001>
module attributes {stable_mosaic.version = 11 : i64} {
  func.func @kernel(%arg0: i32, %arg1: memref<256x57xf32, #tpu.memory_space<vmem>>, %arg2: memref<20x57xf32, #tpu.memory_space<vmem>>, %arg3: memref<1x20xf32, #tpu.memory_space<vmem>>, %arg4: memref<10x20xf32, #tpu.memory_space<vmem>>, %arg5: memref<1x10xf32, #tpu.memory_space<vmem>>, %arg6: memref<2x10xf32, #tpu.memory_space<vmem>>, %arg7: memref<1x2xf32, #tpu.memory_space<vmem>>, %arg8: memref<256x20xf32, #tpu.memory_space<vmem>>, %arg9: memref<256x10xf32, #tpu.memory_space<vmem>>, %arg10: memref<256x2xf32, #tpu.memory_space<vmem>>) attributes {dimension_semantics = [#tpu.dimension_semantics<parallel>], iteration_bounds = array<i64: 2>, scalar_prefetch = 0 : i64, scratch_operands = 0 : i64, tpu.core_type = #tpu.core_type<tc>, window_params = [{transform_indices = @transform_0, window_bounds = array<i64: 256, 57>}, {pipeline_mode = #tpu.pipeline_mode<synchronous>, transform_indices = @transform_1, window_bounds = array<i64: 20, 57>}, {pipeline_mode = #tpu.pipeline_mode<synchronous>, transform_indices = @transform_2, window_bounds = array<i64: 1, 20>}, {pipeline_mode = #tpu.pipeline_mode<synchronous>, transform_indices = @transform_3, window_bounds = array<i64: 10, 20>}, {pipeline_mode = #tpu.pipeline_mode<synchronous>, transform_indices = @transform_4, window_bounds = array<i64: 1, 10>}, {pipeline_mode = #tpu.pipeline_mode<synchronous>, transform_indices = @transform_5, window_bounds = array<i64: 2, 10>}, {pipeline_mode = #tpu.pipeline_mode<synchronous>, transform_indices = @transform_6, window_bounds = array<i64: 1, 2>}, {transform_indices = @transform_7, window_bounds = array<i64: 256, 20>}, {transform_indices = @transform_8, window_bounds = array<i64: 256, 10>}, {transform_indices = @transform_9, window_bounds = array<i64: 256, 2>}]} {
    %c0 = arith.constant 0 : index
    %c0_0 = arith.constant 0 : index
    %0 = vector.load %arg1[%c0, %c0_0] : memref<256x57xf32, #tpu.memory_space<vmem>>, vector<256x57xf32>
    %c0_1 = arith.constant 0 : index
    %c0_2 = arith.constant 0 : index
    %1 = vector.load %arg2[%c0_1, %c0_2] : memref<20x57xf32, #tpu.memory_space<vmem>>, vector<20x57xf32>
    %cst = arith.constant dense<0.000000e+00> : vector<256x20xf32>
    %2 = tpu.matmul %0, %1, %cst {dimension_numbers = #tpu.dot_dimension_numbers<[1], [1], [0], [0], [0, 0, 1, 0], [], []>} : vector<256x57xf32>, vector<20x57xf32>, vector<256x20xf32> -> vector<256x20xf32>
    %c0_3 = arith.constant 0 : index
    %c0_4 = arith.constant 0 : index
    %3 = vector.load %arg3[%c0_3, %c0_4] : memref<1x20xf32, #tpu.memory_space<vmem>>, vector<1x20xf32>
    %4 = vector.broadcast %3 : vector<1x20xf32> to vector<256x20xf32>
    %5 = arith.addf %2, %4 : vector<256x20xf32>
    %cst_5 = arith.constant 0.000000e+00 : f32
    %6 = vector.broadcast %cst_5 : f32 to vector<256x20xf32>
    %7 = arith.maximumf %5, %6 : vector<256x20xf32>
    %c0_6 = arith.constant 0 : index
    %c0_7 = arith.constant 0 : index
    %8 = vector.load %arg4[%c0_6, %c0_7] : memref<10x20xf32, #tpu.memory_space<vmem>>, vector<10x20xf32>
    %cst_8 = arith.constant dense<0.000000e+00> : vector<256x10xf32>
    %9 = tpu.matmul %7, %8, %cst_8 {dimension_numbers = #tpu.dot_dimension_numbers<[1], [1], [0], [0], [0, 0, 1, 0], [], []>} : vector<256x20xf32>, vector<10x20xf32>, vector<256x10xf32> -> vector<256x10xf32>
    %c0_9 = arith.constant 0 : index
    %c0_10 = arith.constant 0 : index
    %10 = vector.load %arg5[%c0_9, %c0_10] : memref<1x10xf32, #tpu.memory_space<vmem>>, vector<1x10xf32>
    %11 = vector.broadcast %10 : vector<1x10xf32> to vector<256x10xf32>
    %12 = arith.addf %9, %11 : vector<256x10xf32>
    %cst_11 = arith.constant 0.000000e+00 : f32
    %13 = vector.broadcast %cst_11 : f32 to vector<256x10xf32>
    %14 = arith.maximumf %12, %13 : vector<256x10xf32>
    %c0_12 = arith.constant 0 : index
    %c0_13 = arith.constant 0 : index
    %15 = vector.load %arg6[%c0_12, %c0_13] : memref<2x10xf32, #tpu.memory_space<vmem>>, vector<2x10xf32>
    %cst_14 = arith.constant dense<0.000000e+00> : vector<256x2xf32>
    %16 = tpu.matmul %14, %15, %cst_14 {dimension_numbers = #tpu.dot_dimension_numbers<[1], [1], [0], [0], [0, 0, 1, 0], [], []>} : vector<256x10xf32>, vector<2x10xf32>, vector<256x2xf32> -> vector<256x2xf32>
    %c0_15 = arith.constant 0 : index
    %c0_16 = arith.constant 0 : index
    %17 = vector.load %arg7[%c0_15, %c0_16] : memref<1x2xf32, #tpu.memory_space<vmem>>, vector<1x2xf32>
    %18 = vector.broadcast %17 : vector<1x2xf32> to vector<256x2xf32>
    %19 = arith.addf %16, %18 : vector<256x2xf32>
    %20 = arith.negf %19 : vector<256x2xf32>
    %21 = math.exp %20 : vector<256x2xf32>
    %cst_17 = arith.constant 1.000000e+00 : f32
    %22 = vector.broadcast %cst_17 : f32 to vector<256x2xf32>
    %23 = arith.addf %22, %21 : vector<256x2xf32>
    %24 = arith.divf %22, %23 : vector<256x2xf32>
    %c0_18 = arith.constant 0 : index
    %c0_19 = arith.constant 0 : index
    %25 = vector.load %arg8[%c0_18, %c0_19] : memref<256x20xf32, #tpu.memory_space<vmem>>, vector<256x20xf32>
    tpu.vector_store %arg8[%c0_18, %c0_19], %7 {strides = array<i32>} : memref<256x20xf32, #tpu.memory_space<vmem>>, vector<256x20xf32>,
    %c0_20 = arith.constant 0 : index
    %c0_21 = arith.constant 0 : index
    %26 = vector.load %arg9[%c0_20, %c0_21] : memref<256x10xf32, #tpu.memory_space<vmem>>, vector<256x10xf32>
    tpu.vector_store %arg9[%c0_20, %c0_21], %14 {strides = array<i32>} : memref<256x10xf32, #tpu.memory_space<vmem>>, vector<256x10xf32>,
    %c0_22 = arith.constant 0 : index
    %c0_23 = arith.constant 0 : index
    %27 = vector.load %arg10[%c0_22, %c0_23] : memref<256x2xf32, #tpu.memory_space<vmem>>, vector<256x2xf32>
    tpu.vector_store %arg10[%c0_22, %c0_23], %24 {strides = array<i32>} : memref<256x2xf32, #tpu.memory_space<vmem>>, vector<256x2xf32>,
    return
  }
  func.func @transform_0(%arg0: i32) -> (i32, i32) {
    %c0_i32 = arith.constant 0 : i32
    %c0_i32_0 = arith.constant 0 : i32
    return %arg0, %c0_i32 : i32, i32
  }
  func.func @transform_1(%arg0: i32) -> (i32, i32) {
    %c0_i32 = arith.constant 0 : i32
    %c0_i32_0 = arith.constant 0 : i32
    %c0_i32_1 = arith.constant 0 : i32
    return %c0_i32, %c0_i32_0 : i32, i32
  }
  func.func @transform_2(%arg0: i32) -> (i32, i32) {
    %c0_i32 = arith.constant 0 : i32
    %c0_i32_0 = arith.constant 0 : i32
    %c0_i32_1 = arith.constant 0 : i32
    return %c0_i32, %c0_i32_0 : i32, i32
  }
  func.func @transform_3(%arg0: i32) -> (i32, i32) {
    %c0_i32 = arith.constant 0 : i32
    %c0_i32_0 = arith.constant 0 : i32
    %c0_i32_1 = arith.constant 0 : i32
    return %c0_i32, %c0_i32_0 : i32, i32
  }
  func.func @transform_4(%arg0: i32) -> (i32, i32) {
    %c0_i32 = arith.constant 0 : i32
    %c0_i32_0 = arith.constant 0 : i32
    %c0_i32_1 = arith.constant 0 : i32
    return %c0_i32, %c0_i32_0 : i32, i32
  }
  func.func @transform_5(%arg0: i32) -> (i32, i32) {
    %c0_i32 = arith.constant 0 : i32
    %c0_i32_0 = arith.constant 0 : i32
    %c0_i32_1 = arith.constant 0 : i32
    return %c0_i32, %c0_i32_0 : i32, i32
  }
  func.func @transform_6(%arg0: i32) -> (i32, i32) {
    %c0_i32 = arith.constant 0 : i32
    %c0_i32_0 = arith.constant 0 : i32
    %c0_i32_1 = arith.constant 0 : i32
    return %c0_i32, %c0_i32_0 : i32, i32
  }
  func.func @transform_7(%arg0: i32) -> (i32, i32) {
    %c0_i32 = arith.constant 0 : i32
    %c0_i32_0 = arith.constant 0 : i32
    return %arg0, %c0_i32 : i32, i32
  }
  func.func @transform_8(%arg0: i32) -> (i32, i32) {
    %c0_i32 = arith.constant 0 : i32
    %c0_i32_0 = arith.constant 0 : i32
    return %arg0, %c0_i32 : i32, i32
  }
  func.func @transform_9(%arg0: i32) -> (i32, i32) {
    %c0_i32 = arith.constant 0 : i32
    %c0_i32_0 = arith.constant 0 : i32
    return %arg0, %c0_i32 : i32, i32
  }
}

</mosaic_0001>

<bundles_post_ra>
// kernel: tpu_custom_call.1
= control target key start
LH: loop header
LB: loop body
LE: loop exit
PB: predicated region body
PF: predicated region fallthrough
CT: control target
= control target key end

     0   :  { %s4820_s0 = inlined_call_operand.vmem [shape: f32[333,57], index: 0, kind: input, shape index: {}]   ;;  %s4821_s1 = inlined_call_operand.vmem [shape: f32[20,57], index: 1, kind: input, shape index: {}]   ;;  %s4822_s2 = inlined_call_operand.vmem [shape: f32[1,20], index: 2, kind: input, shape index: {}]   ;;  %s4823_s3 = inlined_call_operand.vmem [shape: f32[10,20], index: 3, kind: input, shape index: {}]   ;;  %s4824_s4 = inlined_call_operand.vmem [shape: f32[1,10], index: 4, kind: input, shape index: {}]   ;;  %s4825_s5 = inlined_call_operand.vmem [shape: f32[2,10], index: 5, kind: input, shape index: {}]   ;;  %s4826_s6 = inlined_call_operand.vmem [shape: f32[1,2], index: 6, kind: input, shape index: {}]   ;;  %s4827_s7 = inlined_call_operand.vmem [shape: f32[333,20], index: 7, kind: output, shape index: {0}]   ;;  %s4828_s8 = inlined_call_operand.vmem [shape: f32[333,10], index: 8, kind: output, shape index: {1}]   ;;  %s4829_s9 = inlined_call_operand.vmem [shape: f32[333,2], index: 9, kind: output, shape index: {2}]  }
   0x1   :  { %4830 = sst [smem:[#allocation5_spill]] %s4820_s0 }
   0x2   :  { %4831 = sst [smem:[#allocation6_spill]] %s4821_s1 }
   0x3   :  { %4832 = sst [smem:[#allocation7_spill]] %s4822_s2 }
   0x4   :  { %s3637_s30 = smov 0   ;;  %s3639_s10 = smov 0  }
   0x5   :  { %s3641_s11 = smov 0  }
   0x6 LB: > { %s3650_s12 = sadd.s32 4294967295, %s3489_s11   ;;  %s3652_s13 = sadd.s32 1, %s3489_s11   ;;  %s3489_s11 = sphi %s3641_s11, %s4878_s11   ;;  %s3485_s10 = sphi %s3639_s10, %s4877_s10   ;;  %s3481_s30 = sphi %s3637_s30, %s4876_s30  }
   0x7   : > { %s176_s14 = ssub.s32 %s3489_s11, %s3652_s13  ;;  %s179_s15 = sadd.s32 1, %s3485_s10 }
   0x8   : > { %p177_p0 = scmp.eq.s32.totalorder %s176_s14, 0  ;;  %p189_p1 = scmp.ne.s32.totalorder %s3485_s10, %s3481_s30 }
   0x9   : > { %p190_p2 = scmp.eq.s32.totalorder %s3650_s12, 1  ;;  %p2821_p3 = scmp.ge.s32.totalorder %s3489_s11, 1 }
   0xa   : > { %s3660_s16 = scalar_select %p177_p0, %s3485_s10, %s179_s15  }
   0xb   : > { %p3662_p4 = por %p190_p2, %p189_p1  ;;  %p301_p5 = scmp.lt.s32.totalorder %s3489_s11, 3 }
   0xd   : > { %p302_p6 = pnand %p2821_p3, %p301_p5 }
   0xe   : > { %s4834_s1 = sld [smem:[#allocation6_spill]] (!%p302_p6)  ;;  %s3670_s20 = sshll.u32 (!%p302_p6), %s3650_s12, 5 }
   0xf   : > { %305 = sbr.rel (%p302_p6) target bundleno = 849 (0x351), region = 48  ;;  %p353_p7 = scmp.lt.s32.totalorder (!%p302_p6), %s3670_s20, 41 }
  0x10   : > { %s4835_s0 = sld [smem:[#allocation5_spill]] (!%p302_p6)  ;;  %s333_s19 = sand.u32 (!%p302_p6), 1, %s3481_s30  }
  0x11   : > { %s4836_s2 = sld [smem:[#allocation7_spill]] (!%p302_p6) }
  0x14   : > { %v411_v0 = vld [vmem:[%s4834_s1 + $0x10] sm:$0xf]  ;;  %vm416_vm0 = vcmask 465920   ;;  %v410_v1 = vld [vmem:[%s4834_s1 + $0x8] sm:$0xff]  ;;  %s354_s23 = scalar_select %p353_p7, %s3670_s20, 41  ;;  %v409_v2 = vld [vmem:[%s4834_s1] sm:$0xff] }
  0x15   : > { %2827 = vmatpush.xpose.msk.msra.mxu0 %vm416_vm0, %v411_v0  ;;  %3017 = vmatpush.xpose.msk.msra.mxu3 %vm416_vm0, %v411_v0  ;;  %v668_v17 = vld [vmem:[%s4823_s3 + $0x8] sm:$0x3]  ;;  %vm673_vm1 = vcmask 162816   ;;  %v667_v20 = vld [vmem:[%s4823_s3] sm:$0xff]  ;;  %vm926_vm2 = vcmask 80896   ;;  %vm1811_vm6 = vcmask 15360  }
  0x16   : > { %s2826_s24 = sshll.u32 %s354_s23, 3  ;;  %2862 = vmatpush.xpose.msk.msra.mxu1 %vm673_vm1, %v668_v17  ;;  %s3751_s23 = sshll.u32 %s333_s19, 8 }
  0x17   : > { %s3687_s29 = scalar_lea.vmem %s4835_s0, %s2826_s24  ;;  %v3749_v27 = vld [vmem:[%s4836_s2] ss:$0 sm:$0xff]  ;;  %s3759_s30 = scalar_lea.vmem [#allocation2], %s3751_s23  }
  0x18   : > { %v377_v3 = vld [vmem:[%s3687_s29] sm:$0xff]  ;;  %v378_v4 = vld [vmem:[%s3687_s29 + $0x8] sm:$0xff]  ;;  %v379_v5 = vld [vmem:[%s3687_s29 + $0x10] sm:$0xff]  ;;  %s3885_s28 = scalar_lea.vmem [#allocation3], %s3751_s23   ;;  %s4046_s14 = scalar_lea.vmem [#allocation4], %s3751_s23  }
  0x19   : > { %2828 = vmatpush.xpose.msk.msra.mxu0 %vm416_vm0, %v410_v1  ;;  %3018 = vmatpush.xpose.msk.msra.mxu3 %vm416_vm0, %v410_v1  ;;  %v380_v6 = vld [vmem:[%s3687_s29 + $0x18] sm:$0xff]  ;;  %v381_v7 = vld [vmem:[%s3687_s29 + $0x20] sm:$0xff]  ;;  %v382_v8 = vld [vmem:[%s3687_s29 + $0x28] sm:$0xff]  ;;  %s1860_s19 = ssub.s32 (%p3662_p4), 42, %s3670_s20  ;;  %s3008_s21 = sshll.u32 (%p3662_p4), %s3650_s12, 8 }
  0x1a   : > { %v383_v9 = vld [vmem:[%s3687_s29 + $0x30] sm:$0xff]  ;;  %v384_v10 = vld [vmem:[%s3687_s29 + $0x38] sm:$0xff]  ;;  %v385_v11 = vld [vmem:[%s3687_s29 + $0x40] sm:$0xff]  ;;  %2863 = vmatpush.xpose.msk.msra.mxu1 %vm673_vm1, %v667_v20  ;;  %p1861_p8 = scmp.lt.s32.totalorder (%p3662_p4), %s1860_s19, 32  ;;  %s4421_s24 = scalar_lea.vmem (%p3662_p4), %s4827_s7, %s3008_s21  }
  0x1b   : > { %v386_v12 = vld [vmem:[%s3687_s29 + $0x48] sm:$0xff]  ;;  %v401_v13 = vld [vmem:[%s3687_s29 + $0xc0] sm:$0xff]  ;;  %v387_v14 = vld [vmem:[%s3687_s29 + $0x50] sm:$0xff] }
  0x1c   : > { %v402_v15 = vld [vmem:[%s3687_s29 + $0xc8] sm:$0xff]  ;;  %v388_v16 = vld [vmem:[%s3687_s29 + $0x58] sm:$0xff]  ;;  %v389_v18 = vld [vmem:[%s3687_s29 + $0x60] sm:$0xff] }
  0x1d   : > { %2829 = vmatpush.xpose.msk.msra.mxu0 %vm416_vm0, %v409_v2  ;;  %3019 = vmatpush.xpose.msk.msra.mxu3 %vm416_vm0, %v409_v2  ;;  %v403_v19 = vld [vmem:[%s3687_s29 + $0xd0] sm:$0xff]  ;;  %v390_v21 = vld [vmem:[%s3687_s29 + $0x68] sm:$0xff]  ;;  %v404_v22 = vld [vmem:[%s3687_s29 + $0xd8] sm:$0xff] }
  0x1e   : > { %v391_v23 = vld [vmem:[%s3687_s29 + $0x70] sm:$0xff]  ;;  %v405_v24 = vld [vmem:[%s3687_s29 + $0xe0] sm:$0xff]  ;;  %v392_v25 = vld [vmem:[%s3687_s29 + $0x78] sm:$0xff] }
  0x1f   : > { %v406_v26 = vld [vmem:[%s3687_s29 + $0xe8] sm:$0xff]  ;;  %v393_v29 = vld [vmem:[%s3687_s29 + $0x80] sm:$0xff]  ;;  %v407_v31 = vld [vmem:[%s3687_s29 + $0xf0] sm:$0xff] }
  0x20   : > { %2830 = vmatmul.msk.f32.vlgmr.msra.gmra.mxu0 %vm416_vm0, %v377_v3  ;;  %2854 = vmatmul.msk.f32.vlgmr.msra.gmra.mxu3 %vm416_vm0, %v401_v13  ;;  %v394_v34 = vld [vmem:[%s3687_s29 + $0x88] sm:$0xff]  ;;  %v408_v36 = vld [vmem:[%s3687_s29 + $0xf8] sm:$0xff]  ;;  %v395_v39 = vld [vmem:[%s3687_s29 + $0x90] sm:$0xff] }
  0x21   : > { %3020 = vmatpush.xpose.msk.msrb.mxu3 %vm673_vm1, %v668_v17  ;;  %v396_v43 = vld [vmem:[%s3687_s29 + $0x98] sm:$0xff]  ;;  %v397_v47 = vld [vmem:[%s3687_s29 + $0xa0] sm:$0xff]  ;;  %v398_v51 = vld [vmem:[%s3687_s29 + $0xa8] sm:$0xff] }
  0x22   : > { %v399_v55 = vld [vmem:[%s3687_s29 + $0xb0] sm:$0xff]  ;;  %v400_v59 = vld [vmem:[%s3687_s29 + $0xb8] sm:$0xff] }
  0x25   : > { %3021 = vmatpush.xpose.msk.msrb.mxu3 %vm673_vm1, %v667_v20 }
  0x28   : > { %2831 = vmatmul.msk.f32.gmra.mxu0 %vm416_vm0, %v378_v4  ;;  %2855 = vmatmul.msk.f32.gmra.mxu3 %vm416_vm0, %v402_v15 }
  0x30   : > { %2832 = vmatmul.msk.f32.gmra.mxu0 %vm416_vm0, %v379_v5  ;;  %2856 = vmatmul.msk.f32.gmra.mxu3 %vm416_vm0, %v403_v19  ;;  %v921_v19 = vld [vmem:[%s4825_s5] sm:$0x3] }
  0x31   : > { %2896 = vmatpush.xpose.msk.msra.mxu2 %vm926_vm2, %v921_v19  ;;  %3022 = vmatpush.xpose.msk.msra.mxu3 %vm926_vm2, %v921_v19 }
  0x38   : > { %2833 = vmatmul.msk.f32.gmra.mxu0 %vm416_vm0, %v380_v6  ;;  %2857 = vmatmul.msk.f32.gmra.mxu3 %vm416_vm0, %v404_v22 }
  0x40   : > { %2834 = vmatmul.msk.f32.gmra.mxu0 %vm416_vm0, %v381_v7  ;;  %2858 = vmatmul.msk.f32.gmra.mxu3 %vm416_vm0, %v405_v24 }
  0x48   : > { %2835 = vmatmul.msk.f32.gmra.mxu0 %vm416_vm0, %v382_v8  ;;  %2859 = vmatmul.msk.f32.gmra.mxu3 %vm416_vm0, %v406_v26 }
  0x50   : > { %2836 = vmatmul.msk.f32.gmra.mxu0 %vm416_vm0, %v383_v9  ;;  %2860 = vmatmul.msk.f32.gmra.mxu3 %vm416_vm0, %v407_v31 }
  0x58   : > { %2837 = vmatmul.msk.f32.gmra.mxu0 %vm416_vm0, %v384_v10  ;;  %2861 = vmatmul.msk.f32.gmra.mxu3 %vm416_vm0, %v408_v36 }
  0x60   : > { %2838 = vmatmul.msk.f32.gmra.mxu0 %vm416_vm0, %v385_v11 }
  0x68   : > { %2839 = vmatmul.msk.f32.gmra.mxu0 %vm416_vm0, %v386_v12 }
  0x70   : > { %2840 = vmatmul.msk.f32.gmra.mxu0 %vm416_vm0, %v387_v14 }
  0x78   : > { %2841 = vmatmul.msk.f32.gmra.mxu0 %vm416_vm0, %v388_v16 }
  0x80   : > { %2842 = vmatmul.msk.f32.gmra.mxu0 %vm416_vm0, %v389_v18 }
  0x88   : > { %2843 = vmatmul.msk.f32.gmra.mxu0 %vm416_vm0, %v390_v21 }
  0x90   : > { %2844 = vmatmul.msk.f32.gmra.mxu0 %vm416_vm0, %v391_v23 }
  0x98   : > { %2845 = vmatmul.msk.f32.gmra.mxu0 %vm416_vm0, %v392_v25 }
  0x9d   : > { %v539_v28 = vpop.f32.mrf.mxu0 }
  0x9e   : > { %v540_v30 = vadd.f32 %v3749_v27, %v539_v28 }
  0xa0   : > { %v635_v32 = vmax.f32 %v540_v30, 0.0  ;;  %2846 = vmatmul.msk.f32.gmra.mxu0 %vm416_vm0, %v393_v29 }
  0xa2   : > { %1747 = vst.msk [vmem:[%s3759_s30] sm:$0xff] %vm673_vm1, %v635_v32  ;;  %2864 = vmatmul.msk.f32.vlgmr.msra.gmra.mxu1 %vm673_vm1, %v635_v32 }
  0xa3   : > { %v611_v7 = vpop.f32.mrf.mxu3 }
  0xa4   : > { %v3821_v8 = vadd.f32 %v3749_v27, %v611_v7 }
  0xa5   : > { %v542_v33 = vpop.f32.mrf.mxu0 }
  0xa6   : > { %v543_v35 = vadd.f32 %v3749_v27, %v542_v33  ;;  %v659_v10 = vmax.f32 %v3821_v8, 0.0 }
  0xa8   : > { %v636_v37 = vmax.f32 %v543_v35, 0.0  ;;  %2847 = vmatmul.msk.f32.gmra.mxu0 %vm416_vm0, %v394_v34  ;;  %1771 = vst.msk [vmem:[%s3759_s30 + $0xc0] sm:$0xff] %vm673_vm1, %v659_v10 }
  0xaa   : > { %1748 = vst.msk [vmem:[%s3759_s30 + $0x8] sm:$0xff] %vm673_vm1, %v636_v37  ;;  %2865 = vmatmul.msk.f32.gmra.mxu1 %vm673_vm1, %v636_v37 }
  0xab   : > { %v614_v13 = vpop.f32.mrf.mxu3 }
  0xac   : > { %v615_v14 = vadd.f32 %v3749_v27, %v614_v13 }
  0xad   : > { %v545_v38 = vpop.f32.mrf.mxu0 }
  0xae   : > { %v546_v40 = vadd.f32 %v3749_v27, %v545_v38  ;;  %v660_v16 = vmax.f32 %v615_v14, 0.0 }
  0xb0   : > { %v637_v41 = vmax.f32 %v546_v40, 0.0  ;;  %2848 = vmatmul.msk.f32.gmra.mxu0 %vm416_vm0, %v395_v39  ;;  %1772 = vst.msk [vmem:[%s3759_s30 + $0xc8] sm:$0xff] %vm673_vm1, %v660_v16  ;;  %2889 = vmatmul.msk.f32.vlgmr.msrb.gmra.mxu3 %vm673_vm1, %v660_v16 }
  0xb2   : > { %1749 = vst.msk [vmem:[%s3759_s30 + $0x10] sm:$0xff] %vm673_vm1, %v637_v41  ;;  %2866 = vmatmul.msk.f32.gmra.mxu1 %vm673_vm1, %v637_v41  ;;  %v3873_v41 = vld [vmem:[%s4824_s4] ss:$0 sm:$0xff] }
  0xb3   : > { %v617_v20 = vpop.f32.mrf.mxu3 }
  0xb4   : > { %v618_v21 = vadd.f32 %v3749_v27, %v617_v20 }
  0xb5   : > { %v548_v42 = vpop.f32.mrf.mxu0 }
  0xb6   : > { %v549_v44 = vadd.f32 %v3749_v27, %v548_v42  ;;  %v661_v23 = vmax.f32 %v618_v21, 0.0 }
  0xb8   : > { %v638_v45 = vmax.f32 %v549_v44, 0.0  ;;  %2849 = vmatmul.msk.f32.gmra.mxu0 %vm416_vm0, %v396_v43  ;;  %1773 = vst.msk [vmem:[%s3759_s30 + $0xd0] sm:$0xff] %vm673_vm1, %v661_v23  ;;  %2890 = vmatmul.msk.f32.gmra.mxu3 %vm673_vm1, %v661_v23 }
  0xba   : > { %1750 = vst.msk [vmem:[%s3759_s30 + $0x18] sm:$0xff] %vm673_vm1, %v638_v45  ;;  %2867 = vmatmul.msk.f32.gmra.mxu1 %vm673_vm1, %v638_v45 }
  0xbb   : > { %v620_v26 = vpop.f32.mrf.mxu3 }
  0xbc   : > { %v621_v28 = vadd.f32 %v3749_v27, %v620_v26 }
  0xbd   : > { %v551_v46 = vpop.f32.mrf.mxu0 }
  0xbe   : > { %v552_v48 = vadd.f32 %v3749_v27, %v551_v46  ;;  %v662_v30 = vmax.f32 %v621_v28, 0.0 }
  0xc0   : > { %v639_v49 = vmax.f32 %v552_v48, 0.0  ;;  %2850 = vmatmul.msk.f32.gmra.mxu0 %vm416_vm0, %v397_v47  ;;  %1774 = vst.msk [vmem:[%s3759_s30 + $0xd8] sm:$0xff] %vm673_vm1, %v662_v30  ;;  %2891 = vmatmul.msk.f32.gmra.mxu3 %vm673_vm1, %v662_v30 }
  0xc2   : > { %1751 = vst.msk [vmem:[%s3759_s30 + $0x20] sm:$0xff] %vm673_vm1, %v639_v49  ;;  %2868 = vmatmul.msk.f32.gmra.mxu1 %vm673_vm1, %v639_v49 }
  0xc3   : > { %v623_v33 = vpop.f32.mrf.mxu3 }
  0xc4   : > { %v624_v34 = vadd.f32 %v3749_v27, %v623_v33 }
  0xc5   : > { %v554_v50 = vpop.f32.mrf.mxu0 }
  0xc6   : > { %v555_v52 = vadd.f32 %v3749_v27, %v554_v50  ;;  %v663_v36 = vmax.f32 %v624_v34, 0.0 }
  0xc8   : > { %v640_v53 = vmax.f32 %v555_v52, 0.0  ;;  %2851 = vmatmul.msk.f32.gmra.mxu0 %vm416_vm0, %v398_v51  ;;  %1775 = vst.msk [vmem:[%s3759_s30 + $0xe0] sm:$0xff] %vm673_vm1, %v663_v36  ;;  %2892 = vmatmul.msk.f32.gmra.mxu3 %vm673_vm1, %v663_v36 }
  0xca   : > { %1752 = vst.msk [vmem:[%s3759_s30 + $0x28] sm:$0xff] %vm673_vm1, %v640_v53  ;;  %2869 = vmatmul.msk.f32.gmra.mxu1 %vm673_vm1, %v640_v53 }
  0xcb   : > { %v626_v39 = vpop.f32.mrf.mxu3 }
  0xcc   : > { %v627_v40 = vadd.f32 %v3749_v27, %v626_v39 }
  0xcd   : > { %v557_v54 = vpop.f32.mrf.mxu0 }
  0xce   : > { %v558_v56 = vadd.f32 %v3749_v27, %v557_v54  ;;  %v664_v43 = vmax.f32 %v627_v40, 0.0 }
  0xd0   : > { %v641_v57 = vmax.f32 %v558_v56, 0.0  ;;  %2852 = vmatmul.msk.f32.gmra.mxu0 %vm416_vm0, %v399_v55  ;;  %1776 = vst.msk [vmem:[%s3759_s30 + $0xe8] sm:$0xff] %vm673_vm1, %v664_v43  ;;  %2893 = vmatmul.msk.f32.gmra.mxu3 %vm673_vm1, %v664_v43 }
  0xd2   : > { %1753 = vst.msk [vmem:[%s3759_s30 + $0x30] sm:$0xff] %vm673_vm1, %v641_v57  ;;  %2870 = vmatmul.msk.f32.gmra.mxu1 %vm673_vm1, %v641_v57 }
  0xd3   : > { %v629_v49 = vpop.f32.mrf.mxu3 }
  0xd4   : > { %v630_v50 = vadd.f32 %v3749_v27, %v629_v49 }
  0xd5   : > { %v560_v58 = vpop.f32.mrf.mxu0 }
  0xd6   : > { %v561_v60 = vadd.f32 %v3749_v27, %v560_v58  ;;  %v665_v52 = vmax.f32 %v630_v50, 0.0 }
  0xd8   : > { %v642_v61 = vmax.f32 %v561_v60, 0.0  ;;  %2853 = vmatmul.msk.f32.gmra.mxu0 %vm416_vm0, %v400_v59  ;;  %1777 = vst.msk [vmem:[%s3759_s30 + $0xf0] sm:$0xff] %vm673_vm1, %v665_v52  ;;  %2894 = vmatmul.msk.f32.gmra.mxu3 %vm673_vm1, %v665_v52 }
  0xda   : > { %1754 = vst.msk [vmem:[%s3759_s30 + $0x38] sm:$0xff] %vm673_vm1, %v642_v61  ;;  %2871 = vmatmul.msk.f32.gmra.mxu1 %vm673_vm1, %v642_v61 }
  0xdb   : > { %v632_v58 = vpop.f32.mrf.mxu3 }
  0xdc   : > { %v633_v59 = vadd.f32 %v3749_v27, %v632_v58 }
  0xdd   : > { %v563_v62 = vpop.f32.mrf.mxu0 }
  0xde   : > { %v564_v63 = vadd.f32 %v3749_v27, %v563_v62  ;;  %v666_v61 = vmax.f32 %v633_v59, 0.0 }
  0xe0   : > { %v643_v0 = vmax.f32 %v564_v63, 0.0  ;;  %1778 = vst.msk [vmem:[%s3759_s30 + $0xf8] sm:$0xff] %vm673_vm1, %v666_v61  ;;  %2895 = vmatmul.msk.f32.gmra.mxu3 %vm673_vm1, %v666_v61 }
  0xe2   : > { %1755 = vst.msk [vmem:[%s3759_s30 + $0x40] sm:$0xff] %vm673_vm1, %v643_v0  ;;  %2872 = vmatmul.msk.f32.gmra.mxu1 %vm673_vm1, %v643_v0 }
  0xe5   : > { %v566_v1 = vpop.f32.mrf.mxu0 }
  0xe6   : > { %v567_v2 = vadd.f32 %v3749_v27, %v566_v1 }
  0xe8   : > { %v644_v3 = vmax.f32 %v567_v2, 0.0 }
  0xea   : > { %1756 = vst.msk [vmem:[%s3759_s30 + $0x48] sm:$0xff] %vm673_vm1, %v644_v3  ;;  %2873 = vmatmul.msk.f32.gmra.mxu1 %vm673_vm1, %v644_v3 }
  0xed   : > { %v569_v4 = vpop.f32.mrf.mxu0 }
  0xee   : > { %v570_v5 = vadd.f32 %v3749_v27, %v569_v4 }
  0xf0   : > { %v645_v6 = vmax.f32 %v570_v5, 0.0 }
  0xf2   : > { %1757 = vst.msk [vmem:[%s3759_s30 + $0x50] sm:$0xff] %vm673_vm1, %v645_v6  ;;  %2874 = vmatmul.msk.f32.gmra.mxu1 %vm673_vm1, %v645_v6 }
  0xf5   : > { %v572_v9 = vpop.f32.mrf.mxu0 }
  0xf6   : > { %v573_v11 = vadd.f32 %v3749_v27, %v572_v9 }
  0xf8   : > { %v646_v12 = vmax.f32 %v573_v11, 0.0 }
  0xfa   : > { %1758 = vst.msk [vmem:[%s3759_s30 + $0x58] sm:$0xff] %vm673_vm1, %v646_v12  ;;  %2875 = vmatmul.msk.f32.gmra.mxu1 %vm673_vm1, %v646_v12 }
  0xfd   : > { %v575_v15 = vpop.f32.mrf.mxu0 }
  0xfe   : > { %v576_v17 = vadd.f32 %v3749_v27, %v575_v15 }
 0x100   : > { %v647_v18 = vmax.f32 %v576_v17, 0.0 }
 0x102   : > { %1759 = vst.msk [vmem:[%s3759_s30 + $0x60] sm:$0xff] %vm673_vm1, %v647_v18  ;;  %2876 = vmatmul.msk.f32.gmra.mxu1 %vm673_vm1, %v647_v18 }
 0x105   : > { %v578_v22 = vpop.f32.mrf.mxu0 }
 0x106   : > { %v579_v24 = vadd.f32 %v3749_v27, %v578_v22 }
 0x108   : > { %v648_v25 = vmax.f32 %v579_v24, 0.0 }
 0x10a   : > { %1760 = vst.msk [vmem:[%s3759_s30 + $0x68] sm:$0xff] %vm673_vm1, %v648_v25  ;;  %2877 = vmatmul.msk.f32.gmra.mxu1 %vm673_vm1, %v648_v25 }
 0x10d   : > { %v581_v29 = vpop.f32.mrf.mxu0 }
 0x10e   : > { %v582_v31 = vadd.f32 %v3749_v27, %v581_v29 }
 0x110   : > { %v649_v32 = vmax.f32 %v582_v31, 0.0 }
 0x112   : > { %1761 = vst.msk [vmem:[%s3759_s30 + $0x70] sm:$0xff] %vm673_vm1, %v649_v32  ;;  %2878 = vmatmul.msk.f32.gmra.mxu1 %vm673_vm1, %v649_v32 }
 0x115   : > { %v584_v35 = vpop.f32.mrf.mxu0 }
 0x116   : > { %v585_v37 = vadd.f32 %v3749_v27, %v584_v35 }
 0x118   : > { %v650_v38 = vmax.f32 %v585_v37, 0.0 }
 0x11a   : > { %1762 = vst.msk [vmem:[%s3759_s30 + $0x78] sm:$0xff] %vm673_vm1, %v650_v38  ;;  %2879 = vmatmul.msk.f32.gmra.mxu1 %vm673_vm1, %v650_v38 }
 0x11d   : > { %v587_v42 = vpop.f32.mrf.mxu0 }
 0x11e   : > { %v588_v44 = vadd.f32 %v3749_v27, %v587_v42 }
 0x11f   : > { %v793_v45 = vpop.f32.mrf.mxu1 }
 0x120   : > { %v651_v46 = vmax.f32 %v588_v44, 0.0  ;;  %v794_v47 = vadd.f32 %v3873_v41, %v793_v45 }
 0x122   : > { %1763 = vst.msk [vmem:[%s3759_s30 + $0x80] sm:$0xff] %vm673_vm1, %v651_v46  ;;  %v889_v48 = vmax.f32 %v794_v47, 0.0  ;;  %2880 = vmatmul.msk.f32.gmra.mxu1 %vm673_vm1, %v651_v46 }
 0x124   : > { %1779 = vst.msk [vmem:[%s3885_s28] sm:$0xff] %vm926_vm2, %v889_v48  ;;  %2897 = vmatmul.msk.f32.vlgmr.msra.gmra.mxu2 %vm926_vm2, %v889_v48 }
 0x125   : > { %v590_v51 = vpop.f32.mrf.mxu0 }
 0x126   : > { %v591_v53 = vadd.f32 %v3749_v27, %v590_v51 }
 0x127   : > { %v796_v54 = vpop.f32.mrf.mxu1 }
 0x128   : > { %v652_v55 = vmax.f32 %v591_v53, 0.0  ;;  %v797_v56 = vadd.f32 %v3873_v41, %v796_v54 }
 0x12a   : > { %1764 = vst.msk [vmem:[%s3759_s30 + $0x88] sm:$0xff] %vm673_vm1, %v652_v55  ;;  %v890_v57 = vmax.f32 %v797_v56, 0.0  ;;  %2881 = vmatmul.msk.f32.gmra.mxu1 %vm673_vm1, %v652_v55 }
 0x12c   : > { %1780 = vst.msk [vmem:[%s3885_s28 + $0x8] sm:$0xff] %vm926_vm2, %v890_v57  ;;  %2898 = vmatmul.msk.f32.gmra.mxu2 %vm926_vm2, %v890_v57 }
 0x12d   : > { %v593_v60 = vpop.f32.mrf.mxu0 }
 0x12e   : > { %v594_v62 = vadd.f32 %v3749_v27, %v593_v60 }
 0x12f   : > { %v799_v63 = vpop.f32.mrf.mxu1 }
 0x130   : > { %v653_v0 = vmax.f32 %v594_v62, 0.0  ;;  %v800_v1 = vadd.f32 %v3873_v41, %v799_v63 }
 0x132   : > { %1765 = vst.msk [vmem:[%s3759_s30 + $0x90] sm:$0xff] %vm673_vm1, %v653_v0  ;;  %v891_v2 = vmax.f32 %v800_v1, 0.0  ;;  %2882 = vmatmul.msk.f32.gmra.mxu1 %vm673_vm1, %v653_v0 }
 0x133   : > { %v868_v49 = vpop.f32.mrf.mxu3 }
 0x134   : > { %1781 = vst.msk [vmem:[%s3885_s28 + $0x10] sm:$0xff] %vm926_vm2, %v891_v2  ;;  %2899 = vmatmul.msk.f32.gmra.mxu2 %vm926_vm2, %v891_v2  ;;  %v869_v50 = vadd.f32 %v3873_v41, %v868_v49 }
 0x135   : > { %v596_v3 = vpop.f32.mrf.mxu0 }
 0x136   : > { %v597_v4 = vadd.f32 %v3749_v27, %v596_v3  ;;  %v914_v51 = vmax.f32 %v869_v50, 0.0 }
 0x137   : > { %v802_v5 = vpop.f32.mrf.mxu1 }
 0x138   : > { %v654_v6 = vmax.f32 %v597_v4, 0.0  ;;  %v803_v7 = vadd.f32 %v3873_v41, %v802_v5  ;;  %1804 = vst.msk [vmem:[%s3885_s28 + $0xc8] sm:$0xff] %vm926_vm2, %v914_v51  ;;  %2922 = vmatmul.msk.f32.vlgmr.msra.gmra.mxu3 %vm926_vm2, %v914_v51 }
 0x13a   : > { %1766 = vst.msk [vmem:[%s3759_s30 + $0x98] sm:$0xff] %vm673_vm1, %v654_v6  ;;  %v892_v9 = vmax.f32 %v803_v7, 0.0  ;;  %2883 = vmatmul.msk.f32.gmra.mxu1 %vm673_vm1, %v654_v6 }
 0x13b   : > { %v871_v55 = vpop.f32.mrf.mxu3 }
 0x13c   : > { %1782 = vst.msk [vmem:[%s3885_s28 + $0x18] sm:$0xff] %vm926_vm2, %v892_v9  ;;  %2900 = vmatmul.msk.f32.gmra.mxu2 %vm926_vm2, %v892_v9  ;;  %v872_v56 = vadd.f32 %v3873_v41, %v871_v55 }
 0x13d   : > { %v599_v11 = vpop.f32.mrf.mxu0 }
 0x13e   : > { %v600_v12 = vadd.f32 %v3749_v27, %v599_v11  ;;  %v915_v57 = vmax.f32 %v872_v56, 0.0 }
 0x13f   : > { %v805_v13 = vpop.f32.mrf.mxu1 }
 0x140   : > { %v655_v14 = vmax.f32 %v600_v12, 0.0  ;;  %v806_v15 = vadd.f32 %v3873_v41, %v805_v13  ;;  %1805 = vst.msk [vmem:[%s3885_s28 + $0xd0] sm:$0xff] %vm926_vm2, %v915_v57  ;;  %2923 = vmatmul.msk.f32.gmra.mxu3 %vm926_vm2, %v915_v57  ;;  %v4011_v12 = vld [vmem:[%s4826_s6] ss:$0 sm:$0xff] }
 0x142   : > { %1767 = vst.msk [vmem:[%s3759_s30 + $0xa0] sm:$0xff] %vm673_vm1, %v655_v14  ;;  %v893_v16 = vmax.f32 %v806_v15, 0.0  ;;  %2884 = vmatmul.msk.f32.gmra.mxu1 %vm673_vm1, %v655_v14 }
 0x143   : > { %v874_v61 = vpop.f32.mrf.mxu3 }
 0x144   : > { %1783 = vst.msk [vmem:[%s3885_s28 + $0x20] sm:$0xff] %vm926_vm2, %v893_v16  ;;  %2901 = vmatmul.msk.f32.gmra.mxu2 %vm926_vm2, %v893_v16  ;;  %v875_v62 = vadd.f32 %v3873_v41, %v874_v61 }
 0x145   : > { %v602_v17 = vpop.f32.mrf.mxu0 }
 0x146   : > { %v603_v18 = vadd.f32 %v3749_v27, %v602_v17  ;;  %v916_v63 = vmax.f32 %v875_v62, 0.0 }
 0x147   : > { %v808_v19 = vpop.f32.mrf.mxu1 }
 0x148   : > { %v656_v20 = vmax.f32 %v603_v18, 0.0  ;;  %v809_v21 = vadd.f32 %v3873_v41, %v808_v19  ;;  %1806 = vst.msk [vmem:[%s3885_s28 + $0xd8] sm:$0xff] %vm926_vm2, %v916_v63  ;;  %2924 = vmatmul.msk.f32.gmra.mxu3 %vm926_vm2, %v916_v63 }
 0x14a   : > { %1768 = vst.msk [vmem:[%s3759_s30 + $0xa8] sm:$0xff] %vm673_vm1, %v656_v20  ;;  %v894_v22 = vmax.f32 %v809_v21, 0.0  ;;  %2885 = vmatmul.msk.f32.gmra.mxu1 %vm673_vm1, %v656_v20 }
 0x14b   : > { %v877_v3 = vpop.f32.mrf.mxu3 }
 0x14c   : > { %1784 = vst.msk [vmem:[%s3885_s28 + $0x28] sm:$0xff] %vm926_vm2, %v894_v22  ;;  %2902 = vmatmul.msk.f32.gmra.mxu2 %vm926_vm2, %v894_v22  ;;  %v878_v4 = vadd.f32 %v3873_v41, %v877_v3 }
 0x14d   : > { %v605_v23 = vpop.f32.mrf.mxu0 }
 0x14e   : > { %v606_v24 = vadd.f32 %v3749_v27, %v605_v23  ;;  %v917_v5 = vmax.f32 %v878_v4, 0.0 }
 0x14f   : > { %v811_v25 = vpop.f32.mrf.mxu1 }
 0x150   : > { %v657_v26 = vmax.f32 %v606_v24, 0.0  ;;  %v812_v28 = vadd.f32 %v3873_v41, %v811_v25  ;;  %1807 = vst.msk [vmem:[%s3885_s28 + $0xe0] sm:$0xff] %vm926_vm2, %v917_v5  ;;  %2925 = vmatmul.msk.f32.gmra.mxu3 %vm926_vm2, %v917_v5 }
 0x152   : > { %1769 = vst.msk [vmem:[%s3759_s30 + $0xb0] sm:$0xff] %vm673_vm1, %v657_v26  ;;  %v895_v29 = vmax.f32 %v812_v28, 0.0  ;;  %2886 = vmatmul.msk.f32.gmra.mxu1 %vm673_vm1, %v657_v26 }
 0x153   : > { %v880_v11 = vpop.f32.mrf.mxu3 }
 0x154   : > { %1785 = vst.msk [vmem:[%s3885_s28 + $0x30] sm:$0xff] %vm926_vm2, %v895_v29  ;;  %2903 = vmatmul.msk.f32.gmra.mxu2 %vm926_vm2, %v895_v29  ;;  %v881_v13 = vadd.f32 %v3873_v41, %v880_v11 }
 0x155   : > { %v608_v30 = vpop.f32.mrf.mxu0 }
 0x156   : > { %v609_v31 = vadd.f32 %v3749_v27, %v608_v30  ;;  %v918_v14 = vmax.f32 %v881_v13, 0.0 }
 0x157   : > { %v814_v32 = vpop.f32.mrf.mxu1 }
 0x158   : > { %v658_v33 = vmax.f32 %v609_v31, 0.0  ;;  %v815_v34 = vadd.f32 %v3873_v41, %v814_v32  ;;  %1808 = vst.msk [vmem:[%s3885_s28 + $0xe8] sm:$0xff] %vm926_vm2, %v918_v14  ;;  %2926 = vmatmul.msk.f32.gmra.mxu3 %vm926_vm2, %v918_v14 }
 0x15a   : > { %1770 = vst.msk [vmem:[%s3759_s30 + $0xb8] sm:$0xff] %vm673_vm1, %v658_v33  ;;  %v896_v35 = vmax.f32 %v815_v34, 0.0  ;;  %2887 = vmatmul.msk.f32.gmra.mxu1 %vm673_vm1, %v658_v33 }
 0x15b   : > { %v883_v21 = vpop.f32.mrf.mxu3 }
 0x15c   : > { %1786 = vst.msk [vmem:[%s3885_s28 + $0x38] sm:$0xff] %vm926_vm2, %v896_v35  ;;  %2904 = vmatmul.msk.f32.gmra.mxu2 %vm926_vm2, %v896_v35  ;;  %v884_v22 = vadd.f32 %v3873_v41, %v883_v21 }
 0x15e   : > { %v919_v23 = vmax.f32 %v884_v22, 0.0 }
 0x15f   : > { %v817_v36 = vpop.f32.mrf.mxu1 }
 0x160   : > { %v818_v37 = vadd.f32 %v3873_v41, %v817_v36  ;;  %1809 = vst.msk [vmem:[%s3885_s28 + $0xf0] sm:$0xff] %vm926_vm2, %v919_v23  ;;  %2927 = vmatmul.msk.f32.gmra.mxu3 %vm926_vm2, %v919_v23 }
 0x162   : > { %v897_v38 = vmax.f32 %v818_v37, 0.0  ;;  %2888 = vmatmul.msk.f32.gmra.mxu1 %vm673_vm1, %v659_v10 }
 0x163   : > { %v886_v33 = vpop.f32.mrf.mxu3 }
 0x164   : > { %1787 = vst.msk [vmem:[%s3885_s28 + $0x40] sm:$0xff] %vm926_vm2, %v897_v38  ;;  %2905 = vmatmul.msk.f32.gmra.mxu2 %vm926_vm2, %v897_v38  ;;  %v887_v34 = vadd.f32 %v3873_v41, %v886_v33 }
 0x166   : > { %v920_v35 = vmax.f32 %v887_v34, 0.0 }
 0x167   : > { %v820_v27 = vpop.f32.mrf.mxu1 }
 0x168   : > { %v821_v39 = vadd.f32 %v3873_v41, %v820_v27  ;;  %1810 = vst.msk [vmem:[%s3885_s28 + $0xf8] sm:$0xff] %vm926_vm2, %v920_v35  ;;  %2928 = vmatmul.msk.f32.gmra.mxu3 %vm926_vm2, %v920_v35 }
 0x16a   : > { %v898_v40 = vmax.f32 %v821_v39, 0.0 }
 0x16c   : > { %1788 = vst.msk [vmem:[%s3885_s28 + $0x48] sm:$0xff] %vm926_vm2, %v898_v40  ;;  %2906 = vmatmul.msk.f32.gmra.mxu2 %vm926_vm2, %v898_v40 }
 0x16f   : > { %v823_v42 = vpop.f32.mrf.mxu1 }
 0x170   : > { %v824_v43 = vadd.f32 %v3873_v41, %v823_v42 }
 0x172   : > { %v899_v8 = vmax.f32 %v824_v43, 0.0 }
 0x174   : > { %1789 = vst.msk [vmem:[%s3885_s28 + $0x50] sm:$0xff] %vm926_vm2, %v899_v8  ;;  %2907 = vmatmul.msk.f32.gmra.mxu2 %vm926_vm2, %v899_v8 }
 0x177   : > { %v826_v10 = vpop.f32.mrf.mxu1 }
 0x178   : > { %v827_v44 = vadd.f32 %v3873_v41, %v826_v10 }
 0x17a   : > { %v900_v45 = vmax.f32 %v827_v44, 0.0 }
 0x17c   : > { %1790 = vst.msk [vmem:[%s3885_s28 + $0x58] sm:$0xff] %vm926_vm2, %v900_v45  ;;  %2908 = vmatmul.msk.f32.gmra.mxu2 %vm926_vm2, %v900_v45 }
 0x17f   : > { %v829_v46 = vpop.f32.mrf.mxu1 }
 0x180   : > { %v830_v47 = vadd.f32 %v3873_v41, %v829_v46 }
 0x182   : > { %v901_v48 = vmax.f32 %v830_v47, 0.0 }
 0x184   : > { %1791 = vst.msk [vmem:[%s3885_s28 + $0x60] sm:$0xff] %vm926_vm2, %v901_v48  ;;  %2909 = vmatmul.msk.f32.gmra.mxu2 %vm926_vm2, %v901_v48 }
 0x187   : > { %v832_v52 = vpop.f32.mrf.mxu1 }
 0x188   : > { %v833_v53 = vadd.f32 %v3873_v41, %v832_v52 }
 0x18a   : > { %v902_v54 = vmax.f32 %v833_v53, 0.0 }
 0x18c   : > { %1792 = vst.msk [vmem:[%s3885_s28 + $0x68] sm:$0xff] %vm926_vm2, %v902_v54  ;;  %2910 = vmatmul.msk.f32.gmra.mxu2 %vm926_vm2, %v902_v54 }
 0x18f   : > { %v835_v58 = vpop.f32.mrf.mxu1 }
 0x190   : > { %v836_v59 = vadd.f32 %v3873_v41, %v835_v58 }
 0x192   : > { %v903_v60 = vmax.f32 %v836_v59, 0.0 }
 0x194   : > { %1793 = vst.msk [vmem:[%s3885_s28 + $0x70] sm:$0xff] %vm926_vm2, %v903_v60  ;;  %2911 = vmatmul.msk.f32.gmra.mxu2 %vm926_vm2, %v903_v60 }
 0x197   : > { %v838_v0 = vpop.f32.mrf.mxu1 }
 0x198   : > { %v839_v1 = vadd.f32 %v3873_v41, %v838_v0 }
 0x19a   : > { %v904_v2 = vmax.f32 %v839_v1, 0.0 }
 0x19c   : > { %1794 = vst.msk [vmem:[%s3885_s28 + $0x78] sm:$0xff] %vm926_vm2, %v904_v2  ;;  %2912 = vmatmul.msk.f32.gmra.mxu2 %vm926_vm2, %v904_v2 }
 0x19f   : > { %v841_v6 = vpop.f32.mrf.mxu1 }
 0x1a0   : > { %v842_v7 = vadd.f32 %v3873_v41, %v841_v6 }
 0x1a2   : > { %v905_v9 = vmax.f32 %v842_v7, 0.0 }
 0x1a4   : > { %1795 = vst.msk [vmem:[%s3885_s28 + $0x80] sm:$0xff] %vm926_vm2, %v905_v9  ;;  %2913 = vmatmul.msk.f32.gmra.mxu2 %vm926_vm2, %v905_v9 }
 0x1a7   : > { %v844_v15 = vpop.f32.mrf.mxu1  ;;  %v1043_v16 = vpop.f32.mrf.mxu2 }
 0x1a8   : > { %v845_v17 = vadd.f32 %v3873_v41, %v844_v15  ;;  %v1044_v18 = vadd.f32 %v4011_v12, %v1043_v16 }
 0x1aa   : > { %v906_v19 = vmax.f32 %v845_v17, 0.0  ;;  %v2929_v20 = vmul.f32 -1.442695, %v1044_v18 }
 0x1ac   : > { %1796 = vst.msk [vmem:[%s3885_s28 + $0x88] sm:$0xff] %vm926_vm2, %v906_v19  ;;  %3242 = vpow2.f32 %v2929_v20  ;;  %2914 = vmatmul.msk.f32.gmra.mxu2 %vm926_vm2, %v906_v19 }
 0x1af   : > { %v847_v24 = vpop.f32.mrf.mxu1  ;;  %v1046_v25 = vpop.f32.mrf.mxu2 }
 0x1b0   : > { %v848_v26 = vadd.f32 %v3873_v41, %v847_v24  ;;  %v1047_v28 = vadd.f32 %v4011_v12, %v1046_v25 }
 0x1b2   : > { %v3243_v29 = vpop.eup %3242  ;;  %v907_v30 = vmax.f32 %v848_v26, 0.0  ;;  %v2930_v31 = vmul.f32 -1.442695, %v1047_v28 }
 0x1b3   : > { %v1235_v32 = vadd.f32 1.0, %v3243_v29 }
 0x1b4   : > { %1797 = vst.msk [vmem:[%s3885_s28 + $0x90] sm:$0xff] %vm926_vm2, %v907_v30  ;;  %3244 = vpow2.f32 %v2930_v31  ;;  %2915 = vmatmul.msk.f32.gmra.mxu2 %vm926_vm2, %v907_v30 }
 0x1b5   : > { %3246 = vrcp.f32 %v1235_v32  ;;  %v1276_v45 = vand.u32 2147483647, %v1235_v32  ;;  %v1278_v46 = vand.u32 2147483648, %v1235_v32  ;;  %vm1272_vm4 = vweird.f32 %v1235_v32 }
 0x1b7   : > { %v850_v36 = vpop.f32.mrf.mxu1  ;;  %v1049_v37 = vpop.f32.mrf.mxu2  ;;  %v1279_v57 = vor.u32 1.1754944e-38, %v1278_v46  ;;  %vm1277_vm7 = vcmp.eq.f32.partialorder %v1276_v45, 8.507059e+37 }
 0x1b8   : > { %v851_v38 = vadd.f32 %v3873_v41, %v850_v36  ;;  %v1050_v27 = vadd.f32 %v4011_v12, %v1049_v37 }
 0x1ba   : > { %v3245_v39 = vpop.eup %3244  ;;  %v908_v40 = vmax.f32 %v851_v38, 0.0  ;;  %v2931_v42 = vmul.f32 -1.442695, %v1050_v27 }
 0x1bb   : > { %v3247_v43 = vpop.eup %3246  ;;  %v1236_v8 = vadd.f32 1.0, %v3245_v39 }
 0x1bc   : > { %v1268_v10 = vmul.f32 %v3247_v43, %v1235_v32  ;;  %1798 = vst.msk [vmem:[%s3885_s28 + $0x98] sm:$0xff] %vm926_vm2, %v908_v40  ;;  %3248 = vpow2.f32 %v2931_v42  ;;  %2916 = vmatmul.msk.f32.gmra.mxu2 %vm926_vm2, %v908_v40  ;;  %vm1273_vm3 = vweird.f32 %v3247_v43 }
 0x1bd   : > { %3250 = vrcp.f32 %v1236_v8  ;;  %vm1274_vm5 = vmor %vm1272_vm4, %vm1273_vm3  ;;  %v1291_v63 = vand.u32 2147483647, %v1236_v8  ;;  %v1293_v0 = vand.u32 2147483648, %v1236_v8  ;;  %vm1287_vm9 = vweird.f32 %v1236_v8 }
 0x1be   : > { %v1269_v44 = vsub.f32 1.0, %v1268_v10 }
 0x1bf   : > { %v853_v47 = vpop.f32.mrf.mxu1  ;;  %v1052_v48 = vpop.f32.mrf.mxu2  ;;  %v1294_v14 = vor.u32 1.1754944e-38, %v1293_v0  ;;  %vm1292_vm11 = vcmp.eq.f32.partialorder %v1291_v63, 8.507059e+37 }
 0x1c0   : > { %v1270_v49 = vmul.f32 %v3247_v43, %v1269_v44  ;;  %v854_v50 = vadd.f32 %v3873_v41, %v853_v47  ;;  %v1053_v51 = vadd.f32 %v4011_v12, %v1052_v48 }
 0x1c2   : > { %v3249_v52 = vpop.eup %3248  ;;  %v1271_v53 = vadd.f32 %v3247_v43, %v1270_v49  ;;  %v909_v54 = vmax.f32 %v854_v50, 0.0  ;;  %v2932_v55 = vmul.f32 -1.442695, %v1053_v51 }
 0x1c3   : > { %v3251_v56 = vpop.eup %3250  ;;  %v1237_v58 = vadd.f32 1.0, %v3249_v52 }
 0x1c4   : > { %v1275_v59 = vsel %vm1274_vm5, %v3247_v43, %v1271_v53  ;;  %v1283_v60 = vmul.f32 %v3251_v56, %v1236_v8  ;;  %1799 = vst.msk [vmem:[%s3885_s28 + $0xa0] sm:$0xff] %vm926_vm2, %v909_v54  ;;  %3252 = vpow2.f32 %v2932_v55  ;;  %2917 = vmatmul.msk.f32.gmra.mxu2 %vm926_vm2, %v909_v54  ;;  %vm1288_vm8 = vweird.f32 %v3251_v56 }
 0x1c5   : > { %v1280_v61 = vsel %vm1277_vm7, %v1279_v57, %v1275_v59  ;;  %3254 = vrcp.f32 %v1237_v58  ;;  %vm1289_vm10 = vmor %vm1287_vm9, %vm1288_vm8  ;;  %v1306_v20 = vand.u32 2147483647, %v1237_v58  ;;  %v1308_v21 = vand.u32 2147483648, %v1237_v58 }
 0x1c6   : > { %1812 = vst.msk [vmem:[%s4046_s14] sm:$0xff] %vm1811_vm6, %v1280_v61  ;;  %v1284_v62 = vsub.f32 1.0, %v1283_v60  ;;  %vm1302_vm13 = vweird.f32 %v1237_v58 }
 0x1c7   : > { %v856_v1 = vpop.f32.mrf.mxu1  ;;  %v1055_v2 = vpop.f32.mrf.mxu2  ;;  %v1309_v33 = vor.u32 1.1754944e-38, %v1308_v21  ;;  %vm1307_vm15 = vcmp.eq.f32.partialorder %v1306_v20, 8.507059e+37 }
 0x1c8   : > { %v1285_v3 = vmul.f32 %v3251_v56, %v1284_v62  ;;  %v857_v4 = vadd.f32 %v3873_v41, %v856_v1  ;;  %v1056_v5 = vadd.f32 %v4011_v12, %v1055_v2 }
 0x1ca   : > { %v3253_v6 = vpop.eup %3252  ;;  %v1286_v7 = vadd.f32 %v3251_v56, %v1285_v3  ;;  %v910_v9 = vmax.f32 %v857_v4, 0.0  ;;  %v2933_v11 = vmul.f32 -1.442695, %v1056_v5 }
 0x1cb   : > { %v3255_v13 = vpop.eup %3254  ;;  %v1238_v15 = vadd.f32 1.0, %v3253_v6 }
 0x1cc   : > { %v1290_v16 = vsel %vm1289_vm10, %v3251_v56, %v1286_v7  ;;  %v1298_v17 = vmul.f32 %v3255_v13, %v1237_v58  ;;  %1800 = vst.msk [vmem:[%s3885_s28 + $0xa8] sm:$0xff] %vm926_vm2, %v910_v9  ;;  %3256 = vpow2.f32 %v2933_v11  ;;  %2918 = vmatmul.msk.f32.gmra.mxu2 %vm926_vm2, %v910_v9  ;;  %vm1303_vm12 = vweird.f32 %v3255_v13 }
 0x1cd   : > { %v1295_v18 = vsel %vm1292_vm11, %v1294_v14, %v1290_v16  ;;  %3258 = vrcp.f32 %v1238_v15  ;;  %vm1304_vm14 = vmor %vm1302_vm13, %vm1303_vm12  ;;  %v1321_v27 = vand.u32 2147483647, %v1238_v15  ;;  %v1323_v39 = vand.u32 2147483648, %v1238_v15 }
 0x1ce   : > { %1813 = vst.msk [vmem:[%s4046_s14 + $0x8] sm:$0xff] %vm1811_vm6, %v1295_v18  ;;  %v1299_v19 = vsub.f32 1.0, %v1298_v17  ;;  %vm1317_vm1 = vweird.f32 %v1238_v15 }
 0x1cf   : > { %v859_v22 = vpop.f32.mrf.mxu1  ;;  %v1058_v23 = vpop.f32.mrf.mxu2  ;;  %v1324_v49 = vor.u32 1.1754944e-38, %v1323_v39  ;;  %vm1322_vm4 = vcmp.eq.f32.partialorder %v1321_v27, 8.507059e+37 }
 0x1d0   : > { %v1300_v24 = vmul.f32 %v3255_v13, %v1299_v19  ;;  %v860_v25 = vadd.f32 %v3873_v41, %v859_v22  ;;  %v1059_v26 = vadd.f32 %v4011_v12, %v1058_v23 }
 0x1d2   : > { %v3257_v28 = vpop.eup %3256  ;;  %v1301_v29 = vadd.f32 %v3255_v13, %v1300_v24  ;;  %v911_v30 = vmax.f32 %v860_v25, 0.0  ;;  %v2934_v31 = vmul.f32 -1.442695, %v1059_v26 }
 0x1d3   : > { %v3259_v32 = vpop.eup %3258  ;;  %v1239_v34 = vadd.f32 1.0, %v3257_v28 }
 0x1d4   : > { %v1305_v35 = vsel %vm1304_vm14, %v3255_v13, %v1301_v29  ;;  %v1313_v36 = vmul.f32 %v3259_v32, %v1238_v15  ;;  %1801 = vst.msk [vmem:[%s3885_s28 + $0xb0] sm:$0xff] %vm926_vm2, %v911_v30  ;;  %3260 = vpow2.f32 %v2934_v31  ;;  %2919 = vmatmul.msk.f32.gmra.mxu2 %vm926_vm2, %v911_v30  ;;  %vm1318_vm0 = vweird.f32 %v3259_v32 }
 0x1d5   : > { %v1310_v37 = vsel %vm1307_vm15, %v1309_v33, %v1305_v35  ;;  %3262 = vrcp.f32 %v1239_v34  ;;  %vm1319_vm3 = vmor %vm1317_vm1, %vm1318_vm0  ;;  %v1336_v55 = vand.u32 2147483647, %v1239_v34  ;;  %v1338_v56 = vand.u32 2147483648, %v1239_v34 }
 0x1d6   : > { %1814 = vst.msk [vmem:[%s4046_s14 + $0x10] sm:$0xff] %vm1811_vm6, %v1310_v37  ;;  %v1314_v38 = vsub.f32 1.0, %v1313_v36  ;;  %vm1332_vm7 = vweird.f32 %v1239_v34 }
 0x1d7   : > { %v862_v40 = vpop.f32.mrf.mxu1  ;;  %v1061_v42 = vpop.f32.mrf.mxu2  ;;  %v1339_v3 = vor.u32 1.1754944e-38, %v1338_v56  ;;  %vm1337_vm9 = vcmp.eq.f32.partialorder %v1336_v55, 8.507059e+37 }
 0x1d8   : > { %v1315_v43 = vmul.f32 %v3259_v32, %v1314_v38  ;;  %v863_v8 = vadd.f32 %v3873_v41, %v862_v40  ;;  %v1062_v10 = vadd.f32 %v4011_v12, %v1061_v42 }
 0x1da   : > { %v3261_v44 = vpop.eup %3260  ;;  %v1316_v45 = vadd.f32 %v3259_v32, %v1315_v43  ;;  %v912_v46 = vmax.f32 %v863_v8, 0.0  ;;  %v2935_v47 = vmul.f32 -1.442695, %v1062_v10 }
 0x1db   : > { %v3263_v48 = vpop.eup %3262  ;;  %v1240_v50 = vadd.f32 1.0, %v3261_v44 }
 0x1dc   : > { %v1320_v51 = vsel %vm1319_vm3, %v3259_v32, %v1316_v45  ;;  %v1328_v52 = vmul.f32 %v3263_v48, %v1239_v34  ;;  %1802 = vst.msk [vmem:[%s3885_s28 + $0xb8] sm:$0xff] %vm926_vm2, %v912_v46  ;;  %3264 = vpow2.f32 %v2935_v47  ;;  %2920 = vmatmul.msk.f32.gmra.mxu2 %vm926_vm2, %v912_v46  ;;  %vm1333_vm5 = vweird.f32 %v3263_v48 }
 0x1dd   : > { %v1325_v53 = vsel %vm1322_vm4, %v1324_v49, %v1320_v51  ;;  %3266 = vrcp.f32 %v1240_v50  ;;  %vm1334_vm8 = vmor %vm1332_vm7, %vm1333_vm5  ;;  %v1353_v9 = vand.u32 2147483648, %v1240_v50  ;;  %v1351_v14 = vand.u32 2147483647, %v1240_v50 }
 0x1de   : > { %1815 = vst.msk [vmem:[%s4046_s14 + $0x18] sm:$0xff] %vm1811_vm6, %v1325_v53  ;;  %v1329_v54 = vsub.f32 1.0, %v1328_v52  ;;  %vm1347_vm11 = vweird.f32 %v1240_v50 }
 0x1df   : > { %v865_v57 = vpop.f32.mrf.mxu1  ;;  %v1064_v58 = vpop.f32.mrf.mxu2  ;;  %v1354_v20 = vor.u32 1.1754944e-38, %v1353_v9 }
 0x1e0   : > { %v1330_v59 = vmul.f32 %v3263_v48, %v1329_v54  ;;  %v866_v60 = vadd.f32 %v3873_v41, %v865_v57  ;;  %v1065_v61 = vadd.f32 %v4011_v12, %v1064_v58 }
 0x1e2   : > { %v3265_v62 = vpop.eup %3264  ;;  %v1331_v63 = vadd.f32 %v3263_v48, %v1330_v59  ;;  %v913_v0 = vmax.f32 %v866_v60, 0.0  ;;  %v2936_v1 = vmul.f32 -1.442695, %v1065_v61 }
 0x1e3   : > { %v3267_v2 = vpop.eup %3266  ;;  %v1241_v4 = vadd.f32 1.0, %v3265_v62 }
 0x1e4   : > { %v1335_v5 = vsel %vm1334_vm8, %v3263_v48, %v1331_v63  ;;  %v1343_v6 = vmul.f32 %v3267_v2, %v1240_v50  ;;  %1803 = vst.msk [vmem:[%s3885_s28 + $0xc0] sm:$0xff] %vm926_vm2, %v913_v0  ;;  %3268 = vpow2.f32 %v2936_v1  ;;  %2921 = vmatmul.msk.f32.gmra.mxu2 %vm926_vm2, %v913_v0  ;;  %vm1348_vm10 = vweird.f32 %v3267_v2 }
 0x1e5   : > { %v1340_v41 = vsel %vm1337_vm9, %v1339_v3, %v1335_v5  ;;  %3270 = vrcp.f32 %v1241_v4  ;;  %vm1349_vm12 = vmor %vm1347_vm11, %vm1348_vm10  ;;  %vm1352_vm2 = vcmp.eq.f32.partialorder %v1351_v14, 8.507059e+37  ;;  %v1368_v26 = vand.u32 2147483648, %v1241_v4 }
 0x1e6   : > { %1816 = vst.msk [vmem:[%s4046_s14 + $0x20] sm:$0xff] %vm1811_vm6, %v1340_v41  ;;  %v1344_v7 = vsub.f32 1.0, %v1343_v6  ;;  %v1366_v30 = vand.u32 2147483647, %v1241_v4  ;;  %vm1362_vm14 = vweird.f32 %v1241_v4 }
 0x1e7   : > { %v1067_v11 = vpop.f32.mrf.mxu2  ;;  %v1369_v36 = vor.u32 1.1754944e-38, %v1368_v26 }
 0x1e8   : > { %v1345_v13 = vmul.f32 %v3267_v2, %v1344_v7  ;;  %v1068_v15 = vadd.f32 %v4011_v12, %v1067_v11  ;;  %vm1367_vm0 = vcmp.eq.f32.partialorder %v1366_v30, 8.507059e+37 }
 0x1ea   : > { %v3269_v16 = vpop.eup %3268  ;;  %v1346_v17 = vadd.f32 %v3267_v2, %v1345_v13  ;;  %v2937_v18 = vmul.f32 -1.442695, %v1068_v15 }
 0x1eb   : > { %v3271_v19 = vpop.eup %3270  ;;  %v1242_v21 = vadd.f32 1.0, %v3269_v16 }
 0x1ec   : > { %v1350_v22 = vsel %vm1349_vm12, %v3267_v2, %v1346_v17  ;;  %v1358_v23 = vmul.f32 %v3271_v19, %v1241_v4  ;;  %3272 = vpow2.f32 %v2937_v18  ;;  %vm1363_vm13 = vweird.f32 %v3271_v19 }
 0x1ed   : > { %v1355_v24 = vsel %vm1352_vm2, %v1354_v20, %v1350_v22  ;;  %3274 = vrcp.f32 %v1242_v21  ;;  %vm1364_vm15 = vmor %vm1362_vm14, %vm1363_vm13  ;;  %v1383_v42 = vand.u32 2147483648, %v1242_v21  ;;  %v1381_v10 = vand.u32 2147483647, %v1242_v21 }
 0x1ee   : > { %1817 = vst.msk [vmem:[%s4046_s14 + $0x28] sm:$0xff] %vm1811_vm6, %v1355_v24  ;;  %v1359_v25 = vsub.f32 1.0, %v1358_v23  ;;  %vm1377_vm3 = vweird.f32 %v1242_v21 }
 0x1ef   : > { %v1070_v28 = vpop.f32.mrf.mxu2  ;;  %v1384_v49 = vor.u32 1.1754944e-38, %v1383_v42  ;;  %vm1382_vm5 = vcmp.eq.f32.partialorder %v1381_v10, 8.507059e+37 }
 0x1f0   : > { %v1360_v29 = vmul.f32 %v3271_v19, %v1359_v25  ;;  %v1071_v31 = vadd.f32 %v4011_v12, %v1070_v28 }
 0x1f2   : > { %v3273_v32 = vpop.eup %3272  ;;  %v1361_v33 = vadd.f32 %v3271_v19, %v1360_v29  ;;  %v2938_v34 = vmul.f32 -1.442695, %v1071_v31 }
 0x1f3   : > { %v3275_v35 = vpop.eup %3274  ;;  %v1243_v37 = vadd.f32 1.0, %v3273_v32 }
 0x1f4   : > { %v1365_v38 = vsel %vm1364_vm15, %v3271_v19, %v1361_v33  ;;  %v1373_v27 = vmul.f32 %v3275_v35, %v1242_v21  ;;  %3276 = vpow2.f32 %v2938_v34  ;;  %vm1378_vm1 = vweird.f32 %v3275_v35  ;;  %v1118_v19 = vpop.f32.mrf.mxu3 }
 0x1f5   : > { %v1370_v39 = vsel %vm1367_vm0, %v1369_v36, %v1365_v38  ;;  %3278 = vrcp.f32 %v1243_v37  ;;  %vm1379_vm4 = vmor %vm1377_vm3, %vm1378_vm1  ;;  %v1398_v55 = vand.u32 2147483648, %v1243_v37  ;;  %v1396_v58 = vand.u32 2147483647, %v1243_v37 }
 0x1f6   : > { %1818 = vst.msk [vmem:[%s4046_s14 + $0x30] sm:$0xff] %vm1811_vm6, %v1370_v39  ;;  %v1374_v40 = vsub.f32 1.0, %v1373_v27  ;;  %vm1392_vm8 = vweird.f32 %v1243_v37  ;;  %v1119_v24 = vadd.f32 %v4011_v12, %v1118_v19 }
 0x1f7   : > { %v1073_v43 = vpop.f32.mrf.mxu2  ;;  %v1399_v0 = vor.u32 1.1754944e-38, %v1398_v55  ;;  %vm1397_vm10 = vcmp.eq.f32.partialorder %v1396_v58, 8.507059e+37 }
 0x1f8   : > { %v1375_v8 = vmul.f32 %v3275_v35, %v1374_v40  ;;  %v1074_v44 = vadd.f32 %v4011_v12, %v1073_v43  ;;  %v2954_v31 = vmul.f32 -1.442695, %v1119_v24 }
 0x1fa   : > { %v3277_v45 = vpop.eup %3276  ;;  %v1376_v46 = vadd.f32 %v3275_v35, %v1375_v8  ;;  %v2939_v47 = vmul.f32 -1.442695, %v1074_v44 }
 0x1fb   : > { %v3279_v48 = vpop.eup %3278  ;;  %v1244_v50 = vadd.f32 1.0, %v3277_v45 }
 0x1fc   : > { %v1380_v51 = vsel %vm1379_vm4, %v3275_v35, %v1376_v46  ;;  %v1388_v52 = vmul.f32 %v3279_v48, %v1243_v37  ;;  %3280 = vpow2.f32 %v2939_v47  ;;  %vm1393_vm7 = vweird.f32 %v3279_v48  ;;  %v1121_v38 = vpop.f32.mrf.mxu3 }
 0x1fd   : > { %v1385_v53 = vsel %vm1382_vm5, %v1384_v49, %v1380_v51  ;;  %3282 = vrcp.f32 %v1244_v50  ;;  %vm1394_vm9 = vmor %vm1392_vm8, %vm1393_vm7  ;;  %v1413_v6 = vand.u32 2147483648, %v1244_v50  ;;  %v1411_v9 = vand.u32 2147483647, %v1244_v50 }
 0x1fe   : > { %1819 = vst.msk [vmem:[%s4046_s14 + $0x38] sm:$0xff] %vm1811_vm6, %v1385_v53  ;;  %v1389_v54 = vsub.f32 1.0, %v1388_v52  ;;  %vm1407_vm12 = vweird.f32 %v1244_v50  ;;  %v1122_v43 = vadd.f32 %v4011_v12, %v1121_v38 }
 0x1ff   : > { %v1076_v56 = vpop.f32.mrf.mxu2  ;;  %v1414_v17 = vor.u32 1.1754944e-38, %v1413_v6  ;;  %vm1412_vm13 = vcmp.eq.f32.partialorder %v1411_v9, 8.507059e+37 }
 0x200   : > { %v1390_v57 = vmul.f32 %v3279_v48, %v1389_v54  ;;  %v1077_v59 = vadd.f32 %v4011_v12, %v1076_v56 }
 0x202   : > { %v3281_v60 = vpop.eup %3280  ;;  %v1391_v61 = vadd.f32 %v3279_v48, %v1390_v57  ;;  %v2940_v62 = vmul.f32 -1.442695, %v1077_v59 }
 0x203   : > { %v3283_v63 = vpop.eup %3282  ;;  %v1245_v1 = vadd.f32 1.0, %v3281_v60 }
 0x204   : > { %v1395_v2 = vsel %vm1394_vm9, %v3279_v48, %v1391_v61  ;;  %v1403_v3 = vmul.f32 %v3283_v63, %v1244_v50  ;;  %3284 = vpow2.f32 %v2940_v62  ;;  %vm1408_vm11 = vweird.f32 %v3283_v63  ;;  %v1124_v56 = vpop.f32.mrf.mxu3 }
 0x205   : > { %v1400_v4 = vsel %vm1397_vm10, %v1399_v0, %v1395_v2  ;;  %3286 = vrcp.f32 %v1245_v1  ;;  %vm1409_vm2 = vmor %vm1407_vm12, %vm1408_vm11  ;;  %v1426_v25 = vand.u32 2147483647, %v1245_v1  ;;  %v1428_v26 = vand.u32 2147483648, %v1245_v1 }
 0x206   : > { %1820 = vst.msk [vmem:[%s4046_s14 + $0x40] sm:$0xff] %vm1811_vm6, %v1400_v4  ;;  %v1404_v5 = vsub.f32 1.0, %v1403_v3  ;;  %vm1422_vm15 = vweird.f32 %v1245_v1  ;;  %v2955_v48 = vmul.f32 -1.442695, %v1122_v43  ;;  %v1125_v61 = vadd.f32 %v4011_v12, %v1124_v56 }
 0x207   : > { %v1079_v41 = vpop.f32.mrf.mxu2  ;;  %v1429_v36 = vor.u32 1.1754944e-38, %v1428_v26  ;;  %vm1427_vm1 = vcmp.eq.f32.partialorder %v1426_v25, 8.507059e+37 }
 0x208   : > { %v1405_v7 = vmul.f32 %v3283_v63, %v1404_v5  ;;  %v1080_v11 = vadd.f32 %v4011_v12, %v1079_v41  ;;  %v2956_v4 = vmul.f32 -1.442695, %v1125_v61 }
 0x20a   : > { %v3285_v13 = vpop.eup %3284  ;;  %v1406_v14 = vadd.f32 %v3283_v63, %v1405_v7  ;;  %v2941_v15 = vmul.f32 -1.442695, %v1080_v11 }
 0x20b   : > { %v3287_v16 = vpop.eup %3286  ;;  %v1246_v18 = vadd.f32 1.0, %v3285_v13 }
 0x20c   : > { %v1410_v20 = vsel %vm1409_vm2, %v3283_v63, %v1406_v14  ;;  %v1418_v21 = vmul.f32 %v3287_v16, %v1245_v1  ;;  %3288 = vpow2.f32 %v2941_v15  ;;  %vm1423_vm14 = vweird.f32 %v3287_v16 }
 0x20d   : > { %v1415_v22 = vsel %vm1412_vm13, %v1414_v17, %v1410_v20  ;;  %3290 = vrcp.f32 %v1246_v18  ;;  %vm1424_vm0 = vmor %vm1422_vm15, %vm1423_vm14  ;;  %v1441_v8 = vand.u32 2147483647, %v1246_v18  ;;  %v1443_v10 = vand.u32 2147483648, %v1246_v18 }
 0x20e   : > { %1821 = vst.msk [vmem:[%s4046_s14 + $0x48] sm:$0xff] %vm1811_vm6, %v1415_v22  ;;  %v1419_v23 = vsub.f32 1.0, %v1418_v21  ;;  %3292 = vpow2.f32 %v2954_v31  ;;  %vm1437_vm4 = vweird.f32 %v1246_v18 }
 0x20f   : > { %v1082_v28 = vpop.f32.mrf.mxu2  ;;  %v1444_v54 = vor.u32 1.1754944e-38, %v1443_v10  ;;  %vm1442_vm7 = vcmp.eq.f32.partialorder %v1441_v8, 8.507059e+37 }
 0x210   : > { %v1420_v29 = vmul.f32 %v3287_v16, %v1419_v23  ;;  %v1083_v30 = vadd.f32 %v4011_v12, %v1082_v28 }
 0x212   : > { %v3289_v32 = vpop.eup %3288  ;;  %v1421_v33 = vadd.f32 %v3287_v16, %v1420_v29  ;;  %v2942_v34 = vmul.f32 -1.442695, %v1083_v30 }
 0x213   : > { %v3291_v35 = vpop.eup %3290  ;;  %v4095_v37 = vadd.f32 1.0, %v3289_v32 }
 0x214   : > { %v1425_v27 = vsel %vm1424_vm0, %v3287_v16, %v1421_v33  ;;  %v1433_v39 = vmul.f32 %v3291_v35, %v1246_v18  ;;  %3294 = vpow2.f32 %v2942_v34  ;;  %v3293_v45 = vpop.eup %3292  ;;  %vm1438_vm3 = vweird.f32 %v3291_v35  ;;  %v1127_v16 = vpop.f32.mrf.mxu3 }
 0x215   : > { %v1430_v40 = vsel %vm1427_vm1, %v1429_v36, %v1425_v27  ;;  %3296 = vrcp.f32 %v4095_v37  ;;  %v4102_v49 = vadd.f32 1.0, %v3293_v45  ;;  %vm1439_vm5 = vmor %vm1437_vm4, %vm1438_vm3  ;;  %v1456_v62 = vand.u32 2147483647, %v4095_v37 }
 0x216   : > { %1822 = vst.msk [vmem:[%s4046_s14 + $0x50] sm:$0xff] %vm1811_vm6, %v1430_v40  ;;  %v1434_v42 = vsub.f32 1.0, %v1433_v39  ;;  %3298 = vpow2.f32 %v2955_v48  ;;  %v1458_v63 = vand.u32 2147483648, %v4095_v37  ;;  %vm1452_vm9 = vweird.f32 %v4095_v37 }
 0x217   : > { %v1085_v44 = vpop.f32.mrf.mxu2  ;;  %3300 = vrcp.f32 %v4102_v49  ;;  %vm1457_vm11 = vcmp.eq.f32.partialorder %v1456_v62, 8.507059e+37  ;;  %vm1647_vm2 = vweird.f32 %v4102_v49  ;;  %v1653_v25 = vand.u32 2147483648, %v4102_v49 }
 0x218   : > { %v1435_v46 = vmul.f32 %v3291_v35, %v1434_v42  ;;  %v1086_v47 = vadd.f32 %v4011_v12, %v1085_v44  ;;  %v1459_v14 = vor.u32 1.1754944e-38, %v1458_v63  ;;  %v1651_v31 = vand.u32 2147483647, %v4102_v49 }
 0x219   : > { %v1654_v44 = vor.u32 1.1754944e-38, %v1653_v25 }
 0x21a   : > { %v3295_v50 = vpop.eup %3294  ;;  %v1436_v51 = vadd.f32 %v3291_v35, %v1435_v46  ;;  %v2943_v52 = vmul.f32 -1.442695, %v1086_v47  ;;  %vm1652_vm3 = vcmp.eq.f32.partialorder %v1651_v31, 8.507059e+37 }
 0x21b   : > { %v3297_v53 = vpop.eup %3296  ;;  %v4104_v55 = vadd.f32 1.0, %v3295_v50 }
 0x21c   : > { %v1440_v57 = vsel %vm1439_vm5, %v3291_v35, %v1436_v51  ;;  %v1448_v58 = vmul.f32 %v3297_v53, %v4095_v37  ;;  %3302 = vpow2.f32 %v2943_v52  ;;  %v3299_v1 = vpop.eup %3298  ;;  %vm1453_vm8 = vweird.f32 %v3297_v53  ;;  %v1130_v47 = vpop.f32.mrf.mxu3 }
 0x21d   : > { %v1445_v59 = vsel %vm1442_vm7, %v1444_v54, %v1440_v57  ;;  %3304 = vrcp.f32 %v4104_v55  ;;  %v4115_v5 = vpop.eup %3300  ;;  %v4118_v6 = vadd.f32 1.0, %v3299_v1  ;;  %vm1454_vm10 = vmor %vm1452_vm9, %vm1453_vm8  ;;  %v1471_v20 = vand.u32 2147483647, %v4104_v55 }
 0x21e   : > { %1823 = vst.msk [vmem:[%s4046_s14 + $0x58] sm:$0xff] %vm1811_vm6, %v1445_v59  ;;  %v1449_v60 = vsub.f32 1.0, %v1448_v58  ;;  %v1643_v11 = vmul.f32 %v4115_v5, %v4102_v49  ;;  %3306 = vpow2.f32 %v2956_v4  ;;  %v1473_v22 = vand.u32 2147483648, %v4104_v55 }
 0x21f   : > { %v1088_v0 = vpop.f32.mrf.mxu2  ;;  %3308 = vrcp.f32 %v4118_v6  ;;  %vm1648_vm13 = vweird.f32 %v4115_v5  ;;  %vm1467_vm14 = vweird.f32 %v4104_v55  ;;  %vm4140_vm15 = vcmp.eq.f32.partialorder %v1471_v20, 8.507059e+37 }
 0x220   : > { %v1450_v2 = vmul.f32 %v3297_v53, %v1449_v60  ;;  %v1089_v3 = vadd.f32 %v4011_v12, %v1088_v0  ;;  %v1644_v23 = vsub.f32 1.0, %v1643_v11  ;;  %v1128_v35 = vadd.f32 %v4011_v12, %v1127_v16  ;;  %vm4161_vm1 = vmor %vm1647_vm2, %vm1648_vm13 }
 0x221   : > { %v1474_v43 = vor.u32 1.1754944e-38, %v1473_v22  ;;  %vm1662_vm7 = vweird.f32 %v4118_v6  ;;  %v1666_v61 = vand.u32 2147483647, %v4118_v6  ;;  %v1668_v62 = vand.u32 2147483648, %v4118_v6 }
 0x222   : > { %v3303_v41 = vpop.eup %3302  ;;  %v1451_v7 = vadd.f32 %v3297_v53, %v1450_v2  ;;  %v2944_v9 = vmul.f32 -1.442695, %v1089_v3  ;;  %v1645_v30 = vmul.f32 %v4115_v5, %v1644_v23  ;;  %v2957_v49 = vmul.f32 -1.442695, %v1128_v35 }
 0x223   : > { %v3305_v13 = vpop.eup %3304  ;;  %v4122_v15 = vadd.f32 1.0, %v3303_v41  ;;  %v1131_v63 = vadd.f32 %v4011_v12, %v1130_v47 }
 0x224   : > { %v1455_v17 = vsel %vm1454_vm10, %v3297_v53, %v1451_v7  ;;  %v1463_v18 = vmul.f32 %v3305_v13, %v4104_v55  ;;  %3310 = vpow2.f32 %v2944_v9  ;;  %vm1468_vm12 = vweird.f32 %v3305_v13  ;;  %v3307_v26 = vpop.eup %3306  ;;  %v1133_v16 = vpop.f32.mrf.mxu3 }
 0x225   : > { %v1460_v19 = vsel %vm1457_vm11, %v1459_v14, %v1455_v17  ;;  %3312 = vrcp.f32 %v4122_v15  ;;  %v4137_v32 = vpop.eup %3308  ;;  %v4144_v34 = vadd.f32 1.0, %v3307_v26  ;;  %vm4148_vm0 = vmor %vm1467_vm14, %vm1468_vm12  ;;  %v1646_v39 = vadd.f32 %v4115_v5, %v1645_v30 }
 0x226   : > { %1824 = vst.msk [vmem:[%s4046_s14 + $0x60] sm:$0xff] %vm1811_vm6, %v1460_v19  ;;  %v1464_v21 = vsub.f32 1.0, %v1463_v18  ;;  %v1658_v40 = vmul.f32 %v4137_v32, %v4118_v6  ;;  %vm1482_vm4 = vweird.f32 %v4122_v15  ;;  %v1486_v51 = vand.u32 2147483647, %v4122_v15 }
 0x227   : > { %v1091_v24 = vpop.f32.mrf.mxu2  ;;  %3314 = vrcp.f32 %v4144_v34  ;;  %v1650_v52 = vsel %vm4161_vm1, %v4115_v5, %v1646_v39  ;;  %v1488_v54 = vand.u32 2147483648, %v4122_v15  ;;  %vm1663_vm8 = vweird.f32 %v4137_v32 }
 0x228   : > { %v1465_v28 = vmul.f32 %v3305_v13, %v1464_v21  ;;  %v1092_v29 = vadd.f32 %v4011_v12, %v1091_v24  ;;  %v1659_v53 = vsub.f32 1.0, %v1658_v40  ;;  %v1655_v55 = vsel %vm1652_vm3, %v1654_v44, %v1650_v52  ;;  %vm4207_vm11 = vmor %vm1662_vm7, %vm1663_vm8 }
 0x229   : > { %1837 = vst.msk [vmem:[%s4046_s14 + $0xc8] sm:$0xff] %vm1811_vm6, %v1655_v55  ;;  %vm1487_vm10 = vcmp.eq.f32.partialorder %v1486_v51, 8.507059e+37  ;;  %v1489_v7 = vor.u32 1.1754944e-38, %v1488_v54  ;;  %vm1667_vm12 = vcmp.eq.f32.partialorder %v1666_v61, 8.507059e+37  ;;  %v2958_v6 = vmul.f32 -1.442695, %v1131_v63 }
 0x22a   : > { %v3311_v36 = vpop.eup %3310  ;;  %v1466_v37 = vadd.f32 %v3305_v13, %v1465_v28  ;;  %v2945_v27 = vmul.f32 -1.442695, %v1092_v29  ;;  %v1660_v59 = vmul.f32 %v4137_v32, %v1659_v53  ;;  %vm1677_vm14 = vweird.f32 %v4144_v34 }
 0x22b   : > { %v3313_v42 = vpop.eup %3312  ;;  %v4155_v8 = vadd.f32 1.0, %v3311_v36  ;;  %v1681_v30 = vand.u32 2147483647, %v4144_v34  ;;  %v1683_v31 = vand.u32 2147483648, %v4144_v34 }
 0x22c   : > { %v1470_v45 = vsel %vm4148_vm0, %v3305_v13, %v1466_v37  ;;  %v1478_v46 = vmul.f32 %v3313_v42, %v4122_v15  ;;  %3316 = vpow2.f32 %v2945_v27  ;;  %vm1483_vm5 = vweird.f32 %v3313_v42 }
 0x22d   : > { %v1475_v48 = vsel %vm4140_vm15, %v1474_v43, %v1470_v45  ;;  %3318 = vrcp.f32 %v4155_v8  ;;  %v4186_v60 = vpop.eup %3314  ;;  %vm4194_vm9 = vmor %vm1482_vm4, %vm1483_vm5  ;;  %v1661_v4 = vadd.f32 %v4137_v32, %v1660_v59  ;;  %v1669_v13 = vor.u32 1.1754944e-38, %v1668_v62  ;;  %v1136_v45 = vpop.f32.mrf.mxu3 }
 0x22e   : > { %1825 = vst.msk [vmem:[%s4046_s14 + $0x68] sm:$0xff] %vm1811_vm6, %v1475_v48  ;;  %v1479_v50 = vsub.f32 1.0, %v1478_v46  ;;  %3320 = vpow2.f32 %v2957_v49  ;;  %v1673_v5 = vmul.f32 %v4186_v60, %v4144_v34  ;;  %vm1497_vm2 = vweird.f32 %v4155_v8 }
 0x22f   : > { %v1094_v56 = vpop.f32.mrf.mxu2  ;;  %v1501_v19 = vand.u32 2147483647, %v4155_v8  ;;  %v1665_v20 = vsel %vm4207_vm11, %v4137_v32, %v1661_v4  ;;  %v1503_v23 = vand.u32 2147483648, %v4155_v8  ;;  %vm1678_vm15 = vweird.f32 %v4186_v60 }
 0x230   : > { %v1480_v57 = vmul.f32 %v3313_v42, %v1479_v50  ;;  %v1095_v58 = vadd.f32 %v4011_v12, %v1094_v56  ;;  %v1674_v21 = vsub.f32 1.0, %v1673_v5  ;;  %v1670_v24 = vsel %vm1667_vm12, %v1669_v13, %v1665_v20  ;;  %vm4241_vm3 = vmor %vm1677_vm14, %vm1678_vm15  ;;  %v4258_v50 = vld [vmem:[%s4826_s6] ss:$0 sm:$0xff] }
 0x231   : > { %1838 = vst.msk [vmem:[%s4046_s14 + $0xd0] sm:$0xff] %vm1811_vm6, %v1670_v24  ;;  %vm1502_vm1 = vcmp.eq.f32.partialorder %v1501_v19, 8.507059e+37  ;;  %v1504_v38 = vor.u32 1.1754944e-38, %v1503_v23  ;;  %v1684_v40 = vor.u32 1.1754944e-38, %v1683_v31  ;;  %vm1682_vm4 = vcmp.eq.f32.partialorder %v1681_v30, 8.507059e+37 }
 0x232   : > { %v3317_v0 = vpop.eup %3316  ;;  %v1481_v1 = vadd.f32 %v3313_v42, %v1480_v57  ;;  %v2946_v3 = vmul.f32 -1.442695, %v1095_v58  ;;  %v1675_v29 = vmul.f32 %v4186_v60, %v1674_v21  ;;  %v1134_v51 = vadd.f32 %v4258_v50, %v1133_v16 }
 0x233   : > { %v3319_v41 = vpop.eup %3318  ;;  %v4201_v9 = vadd.f32 1.0, %v3317_v0  ;;  %v1137_v56 = vadd.f32 %v4258_v50, %v1136_v45 }
 0x234   : > { %v1485_v14 = vsel %vm4194_vm9, %v3313_v42, %v1481_v1  ;;  %v1493_v15 = vmul.f32 %v3319_v41, %v4155_v8  ;;  %3322 = vpow2.f32 %v2946_v3  ;;  %v3321_v22 = vpop.eup %3320  ;;  %vm1498_vm13 = vweird.f32 %v3319_v41 }
 0x235   : > { %v1490_v17 = vsel %vm1487_vm10, %v1489_v7, %v1485_v14  ;;  %3324 = vrcp.f32 %v4201_v9  ;;  %v4231_v32 = vadd.f32 1.0, %v3321_v22  ;;  %vm1499_vm0 = vmor %vm1497_vm2, %vm1498_vm13  ;;  %v1676_v36 = vadd.f32 %v4186_v60, %v1675_v29 }
 0x236   : > { %1826 = vst.msk [vmem:[%s4046_s14 + $0x70] sm:$0xff] %vm1811_vm6, %v1490_v17  ;;  %v1494_v18 = vsub.f32 1.0, %v1493_v15  ;;  %3326 = vpow2.f32 %v2958_v6  ;;  %v1516_v34 = vand.u32 2147483647, %v4201_v9  ;;  %v1518_v47 = vand.u32 2147483648, %v4201_v9 }
 0x237   : > { %v1097_v25 = vpop.f32.mrf.mxu2  ;;  %3328 = vrcp.f32 %v4231_v32  ;;  %v1680_v44 = vsel %vm4241_vm3, %v4186_v60, %v1676_v36  ;;  %vm1512_vm7 = vweird.f32 %v4201_v9  ;;  %v2959_v0 = vmul.f32 -1.442695, %v1134_v51 }
 0x238   : > { %v1495_v26 = vmul.f32 %v3319_v41, %v1494_v18  ;;  %v1098_v28 = vadd.f32 %v4011_v12, %v1097_v25  ;;  %v1685_v48 = vsel %vm1682_vm4, %v1684_v40, %v1680_v44  ;;  %vm1517_vm8 = vcmp.eq.f32.partialorder %v1516_v34, 8.507059e+37 }
 0x239   : > { %1839 = vst.msk [vmem:[%s4046_s14 + $0xd8] sm:$0xff] %vm1811_vm6, %v1685_v48  ;;  %v1519_v62 = vor.u32 1.1754944e-38, %v1518_v47  ;;  %vm1692_vm10 = vweird.f32 %v4231_v32  ;;  %v2960_v5 = vmul.f32 -1.442695, %v1137_v56  ;;  %v1696_v13 = vand.u32 2147483647, %v4231_v32 }
 0x23a   : > { %v3323_v33 = vpop.eup %3322  ;;  %v1496_v35 = vadd.f32 %v3319_v41, %v1495_v26  ;;  %v2947_v12 = vmul.f32 -1.442695, %v1098_v28 }
 0x23b   : > { %v3325_v37 = vpop.eup %3324  ;;  %v4237_v27 = vadd.f32 1.0, %v3323_v33 }
 0x23c   : > { %v1500_v42 = vsel %vm1499_vm0, %v3319_v41, %v1496_v35  ;;  %v1508_v43 = vmul.f32 %v3325_v37, %v4201_v9  ;;  %3330 = vpow2.f32 %v2947_v12  ;;  %v3327_v46 = vpop.eup %3326  ;;  %vm1513_vm5 = vweird.f32 %v3325_v37 }
 0x23d   : > { %v1505_v8 = vsel %vm1502_vm1, %v1504_v38, %v1500_v42  ;;  %3332 = vrcp.f32 %v4237_v27  ;;  %v4264_v54 = vadd.f32 1.0, %v3327_v46  ;;  %v4266_v55 = vpop.eup %3328  ;;  %vm1514_vm9 = vmor %vm1512_vm7, %vm1513_vm5  ;;  %v1531_v3 = vand.u32 2147483647, %v4237_v27 }
 0x23e   : > { %1827 = vst.msk [vmem:[%s4046_s14 + $0x78] sm:$0xff] %vm1811_vm6, %v1505_v8  ;;  %v1509_v10 = vsub.f32 1.0, %v1508_v43  ;;  %v1688_v60 = vmul.f32 %v4266_v55, %v4231_v32  ;;  %vm1693_vm11 = vweird.f32 %v4266_v55  ;;  %v1698_v9 = vand.u32 2147483648, %v4231_v32 }
 0x23f   : > { %v1100_v49 = vpop.f32.mrf.mxu2  ;;  %3334 = vrcp.f32 %v4264_v54  ;;  %v1533_v11 = vand.u32 2147483648, %v4237_v27  ;;  %vm1527_vm2 = vweird.f32 %v4237_v27  ;;  %vm4290_vm13 = vcmp.eq.f32.partialorder %v1531_v3, 8.507059e+37  ;;  %vm4296_vm14 = vmor %vm1692_vm10, %vm1693_vm11 }
 0x240   : > { %v1510_v52 = vmul.f32 %v3325_v37, %v1509_v10  ;;  %v1101_v53 = vadd.f32 %v4258_v50, %v1100_v49  ;;  %v1689_v7 = vsub.f32 1.0, %v1688_v60  ;;  %v1699_v23 = vor.u32 1.1754944e-38, %v1698_v9 }
 0x241   : > { %v1534_v26 = vor.u32 1.1754944e-38, %v1533_v11  ;;  %vm1697_vm0 = vcmp.eq.f32.partialorder %v1696_v13, 8.507059e+37  ;;  %vm1707_vm1 = vweird.f32 %v4264_v54  ;;  %v1711_v42 = vand.u32 2147483647, %v4264_v54 }
 0x242   : > { %v3331_v57 = vpop.eup %3330  ;;  %v1511_v58 = vadd.f32 %v3325_v37, %v1510_v52  ;;  %v2948_v59 = vmul.f32 -1.442695, %v1101_v53  ;;  %v1690_v16 = vmul.f32 %v4266_v55, %v1689_v7 }
 0x243   : > { %v3333_v61 = vpop.eup %3332  ;;  %v4272_v63 = vadd.f32 1.0, %v3331_v57 }
 0x244   : > { %v1515_v1 = vsel %vm1514_vm9, %v3325_v37, %v1511_v58  ;;  %v1523_v2 = vmul.f32 %v3333_v61, %v4237_v27  ;;  %3336 = vpow2.f32 %v2948_v59  ;;  %vm1528_vm12 = vweird.f32 %v3333_v61 }
 0x245   : > { %v1520_v4 = vsel %vm1517_vm8, %v1519_v62, %v1515_v1  ;;  %3338 = vrcp.f32 %v4272_v63  ;;  %v4287_v6 = vpop.eup %3334  ;;  %v1691_v22 = vadd.f32 %v4266_v55, %v1690_v16  ;;  %vm1529_vm15 = vmor %vm1527_vm2, %vm1528_vm12  ;;  %v1546_v32 = vand.u32 2147483647, %v4272_v63 }
 0x246   : > { %1828 = vst.msk [vmem:[%s4046_s14 + $0x80] sm:$0xff] %vm1811_vm6, %v1520_v4  ;;  %v1524_v41 = vsub.f32 1.0, %v1523_v2  ;;  %3340 = vpow2.f32 %v2959_v0  ;;  %v1703_v29 = vmul.f32 %v4287_v6, %v4264_v54  ;;  %v1548_v36 = vand.u32 2147483648, %v4272_v63 }
 0x247   : > { %v1103_v14 = vpop.f32.mrf.mxu2  ;;  %3342 = vpow2.f32 %v2960_v5  ;;  %v1695_v33 = vsel %vm4296_vm14, %v4266_v55, %v1691_v22  ;;  %v1713_v37 = vand.u32 2147483648, %v4264_v54  ;;  %vm1708_vm3 = vweird.f32 %v4287_v6 }
 0x248   : > { %v1525_v15 = vmul.f32 %v3333_v61, %v1524_v41  ;;  %v1104_v17 = vadd.f32 %v4258_v50, %v1103_v14  ;;  %v1700_v27 = vsel %vm1697_vm0, %v1699_v23, %v1695_v33  ;;  %v1704_v40 = vsub.f32 1.0, %v1703_v29  ;;  %vm4332_vm7 = vmor %vm1707_vm1, %vm1708_vm3 }
 0x249   : > { %1840 = vst.msk [vmem:[%s4046_s14 + $0xe0] sm:$0xff] %vm1811_vm6, %v1700_v27  ;;  %vm1542_vm5 = vweird.f32 %v4272_v63  ;;  %v1714_v48 = vor.u32 1.1754944e-38, %v1713_v37  ;;  %v1549_v52 = vor.u32 1.1754944e-38, %v1548_v36  ;;  %vm1712_vm9 = vcmp.eq.f32.partialorder %v1711_v42, 8.507059e+37 }
 0x24a   : > { %v3337_v20 = vpop.eup %3336  ;;  %v1526_v21 = vadd.f32 %v3333_v61, %v1525_v15  ;;  %v2949_v24 = vmul.f32 -1.442695, %v1104_v17  ;;  %v1705_v45 = vmul.f32 %v4287_v6, %v1704_v40  ;;  %vm1547_vm10 = vcmp.eq.f32.partialorder %v1546_v32, 8.507059e+37 }
 0x24b   : > { %v3339_v25 = vpop.eup %3338  ;;  %v4301_v28 = vadd.f32 1.0, %v3337_v20 }
 0x24c   : > { %v1530_v30 = vsel %vm1529_vm15, %v3333_v61, %v1526_v21  ;;  %v1538_v31 = vmul.f32 %v3339_v25, %v4272_v63  ;;  %v3341_v35 = vpop.eup %3340  ;;  %vm1543_vm4 = vweird.f32 %v3339_v25  ;;  %v1706_v55 = vadd.f32 %v4287_v6, %v1705_v45 }
 0x24d   : > { %v1535_v12 = vsel %vm4290_vm13, %v1534_v26, %v1530_v30  ;;  %3344 = vrcp.f32 %v4301_v28  ;;  %v3343_v39 = vpop.eup %3342  ;;  %v4322_v8 = vadd.f32 1.0, %v3341_v35  ;;  %vm1544_vm8 = vmor %vm1542_vm5, %vm1543_vm4  ;;  %v1561_v53 = vand.u32 2147483647, %v4301_v28 }
 0x24e   : > { %1829 = vst.msk [vmem:[%s4046_s14 + $0x88] sm:$0xff] %vm1811_vm6, %v1535_v12  ;;  %v1539_v38 = vsub.f32 1.0, %v1538_v31  ;;  %3346 = vpow2.f32 %v2949_v24  ;;  %v4325_v44 = vadd.f32 1.0, %v3343_v39  ;;  %v1563_v59 = vand.u32 2147483648, %v4301_v28 }
 0x24f   : > { %v1106_v43 = vpop.f32.mrf.mxu2  ;;  %3348 = vrcp.f32 %v4322_v8  ;;  %v1710_v61 = vsel %vm4332_vm7, %v4287_v6, %v1706_v55  ;;  %vm1557_vm11 = vweird.f32 %v4301_v28  ;;  %vm4349_vm12 = vcmp.eq.f32.partialorder %v1561_v53, 8.507059e+37 }
 0x250   : > { %v1540_v10 = vmul.f32 %v3339_v25, %v1539_v38  ;;  %v1107_v34 = vadd.f32 %v4258_v50, %v1106_v43  ;;  %3350 = vrcp.f32 %v4325_v44  ;;  %v1715_v63 = vsel %vm1712_vm9, %v1714_v48, %v1710_v61 }
 0x251   : > { %1841 = vst.msk [vmem:[%s4046_s14 + $0xe8] sm:$0xff] %vm1811_vm6, %v1715_v63  ;;  %v1728_v2 = vand.u32 2147483648, %v4322_v8  ;;  %v1564_v9 = vor.u32 1.1754944e-38, %v1563_v59  ;;  %vm1722_vm13 = vweird.f32 %v4322_v8  ;;  %v1726_v11 = vand.u32 2147483647, %v4322_v8 }
 0x252   : > { %v1541_v46 = vadd.f32 %v3339_v25, %v1540_v10  ;;  %v2950_v49 = vmul.f32 -1.442695, %v1107_v34  ;;  %vm1737_vm0 = vweird.f32 %v4325_v44  ;;  %v1743_v22 = vand.u32 2147483648, %v4325_v44 }
 0x253   : > { %v3345_v51 = vpop.eup %3344  ;;  %v1729_v18 = vor.u32 1.1754944e-38, %v1728_v2  ;;  %v1741_v26 = vand.u32 2147483647, %v4325_v44  ;;  %vm1727_vm4 = vcmp.eq.f32.partialorder %v1726_v11, 8.507059e+37 }
 0x254   : > { %v3347_v56 = vpop.eup %3346  ;;  %v1545_v54 = vsel %vm1544_vm8, %v3339_v25, %v1541_v46  ;;  %v1553_v57 = vmul.f32 %v3345_v51, %v4301_v28  ;;  %3352 = vpow2.f32 %v2950_v49  ;;  %vm1558_vm2 = vweird.f32 %v3345_v51 }
 0x255   : > { %v1550_v58 = vsel %vm1547_vm10, %v1549_v52, %v1545_v54  ;;  %v4341_v60 = vadd.f32 1.0, %v3347_v56  ;;  %v3349_v0 = vpop.eup %3348  ;;  %vm1559_vm15 = vmor %vm1557_vm11, %vm1558_vm2  ;;  %v1744_v12 = vor.u32 1.1754944e-38, %v1743_v22  ;;  %vm1742_vm7 = vcmp.eq.f32.partialorder %v1741_v26, 8.507059e+37 }
 0x256   : > { %1830 = vst.msk [vmem:[%s4046_s14 + $0x90] sm:$0xff] %vm1811_vm6, %v1550_v58  ;;  %v1554_v62 = vsub.f32 1.0, %v1553_v57  ;;  %v3351_v4 = vpop.eup %3350  ;;  %v1718_v41 = vmul.f32 %v3349_v0, %v4322_v8  ;;  %vm1723_vm14 = vweird.f32 %v3349_v0 }
 0x257   : > { %3354 = vrcp.f32 %v4341_v60  ;;  %v1109_v3 = vpop.f32.mrf.mxu2  ;;  %v1733_v13 = vmul.f32 %v3351_v4, %v4325_v44  ;;  %vm4373_vm1 = vmor %vm1722_vm13, %vm1723_vm14  ;;  %vm1738_vm3 = vweird.f32 %v3351_v4  ;;  %v1578_v37 = vand.u32 2147483648, %v4341_v60 }
 0x258   : > { %v1555_v5 = vmul.f32 %v3345_v51, %v1554_v62  ;;  %v1110_v7 = vadd.f32 %v4258_v50, %v1109_v3  ;;  %v1719_v16 = vsub.f32 1.0, %v1718_v41  ;;  %vm4385_vm5 = vmor %vm1737_vm0, %vm1738_vm3  ;;  %v1576_v42 = vand.u32 2147483647, %v4341_v60 }
 0x259   : > { %v1734_v19 = vsub.f32 1.0, %v1733_v13  ;;  %vm1572_vm9 = vweird.f32 %v4341_v60  ;;  %v1579_v47 = vor.u32 1.1754944e-38, %v1578_v37 }
 0x25a   : > { %v3353_v14 = vpop.eup %3352  ;;  %v1556_v15 = vadd.f32 %v3345_v51, %v1555_v5  ;;  %v2951_v17 = vmul.f32 -1.442695, %v1110_v7  ;;  %v1720_v21 = vmul.f32 %v3349_v0, %v1719_v16  ;;  %vm1577_vm11 = vcmp.eq.f32.partialorder %v1576_v42, 8.507059e+37 }
 0x25b   : > { %v4364_v6 = vadd.f32 1.0, %v3353_v14  ;;  %v1735_v30 = vmul.f32 %v3351_v4, %v1734_v19 }
 0x25c   : > { %v1560_v20 = vsel %vm1559_vm15, %v3345_v51, %v1556_v15  ;;  %3356 = vpow2.f32 %v2951_v17  ;;  %v1721_v29 = vadd.f32 %v3349_v0, %v1720_v21 }
 0x25d   : > { %v3355_v23 = vpop.eup %3354  ;;  %v1565_v24 = vsel %vm4349_vm12, %v1564_v9, %v1560_v20  ;;  %3358 = vrcp.f32 %v4364_v6  ;;  %v1736_v27 = vadd.f32 %v3351_v4, %v1735_v30  ;;  %v1593_v52 = vand.u32 2147483648, %v4364_v6 }
 0x25e   : > { %1831 = vst.msk [vmem:[%s4046_s14 + $0x98] sm:$0xff] %vm1811_vm6, %v1565_v24  ;;  %v1568_v28 = vmul.f32 %v3355_v23, %v4341_v60  ;;  %v1725_v33 = vsel %vm4373_vm1, %v3349_v0, %v1721_v29  ;;  %vm1573_vm8 = vweird.f32 %v3355_v23  ;;  %v1591_v56 = vand.u32 2147483647, %v4364_v6 }
 0x25f   : > { %v1112_v31 = vpop.f32.mrf.mxu2  ;;  %v1730_v38 = vsel %vm1727_vm4, %v1729_v18, %v1725_v33  ;;  %v1740_v34 = vsel %vm4385_vm5, %v3351_v4, %v1736_v27  ;;  %vm1574_vm10 = vmor %vm1572_vm9, %vm1573_vm8  ;;  %vm1587_vm2 = vweird.f32 %v4364_v6  ;;  %v1594_v60 = vor.u32 1.1754944e-38, %v1593_v52 }
 0x260   : > { %v1569_v32 = vsub.f32 1.0, %v1568_v28  ;;  %v1113_v36 = vadd.f32 %v4258_v50, %v1112_v31  ;;  %1842 = vst.msk [vmem:[%s4046_s14 + $0xf0] sm:$0xff] %vm1811_vm6, %v1730_v38  ;;  %v1745_v46 = vsel %vm1742_vm7, %v1744_v12, %v1740_v34  ;;  %vm1592_vm14 = vcmp.eq.f32.partialorder %v1591_v56, 8.507059e+37 }
 0x261   : > { %1843 = vst.msk [vmem:[%s4046_s14 + $0xf8] sm:$0xff] %vm1811_vm6, %v1745_v46 }
 0x262   : > { %v3357_v39 = vpop.eup %3356  ;;  %v1570_v40 = vmul.f32 %v3355_v23, %v1569_v32  ;;  %v2952_v43 = vmul.f32 -1.442695, %v1113_v36 }
 0x263   : > { %v3359_v8 = vpop.eup %3358  ;;  %v1257_v10 = vadd.f32 1.0, %v3357_v39 }
 0x264   : > { %v1571_v44 = vadd.f32 %v3355_v23, %v1570_v40  ;;  %v1583_v45 = vmul.f32 %v3359_v8, %v4364_v6  ;;  %vm1588_vm12 = vweird.f32 %v3359_v8 }
 0x265   : > { %3360 = vrcp.f32 %v1257_v10  ;;  %vm1589_vm13 = vmor %vm1587_vm2, %vm1588_vm12  ;;  %v1608_v3 = vand.u32 2147483648, %v1257_v10  ;;  %v1606_v4 = vand.u32 2147483647, %v1257_v10  ;;  %vm1602_vm0 = vweird.f32 %v1257_v10 }
 0x266   : > { %v1575_v48 = vsel %vm1574_vm10, %v3355_v23, %v1571_v44  ;;  %v1584_v49 = vsub.f32 1.0, %v1583_v45  ;;  %3362 = vpow2.f32 %v2952_v43 }
 0x267   : > { %v1580_v51 = vsel %vm1577_vm11, %v1579_v47, %v1575_v48  ;;  %v1115_v53 = vpop.f32.mrf.mxu2  ;;  %v1609_v7 = vor.u32 1.1754944e-38, %v1608_v3  ;;  %vm1607_vm3 = vcmp.eq.f32.partialorder %v1606_v4, 8.507059e+37 }
 0x268   : > { %1832 = vst.msk [vmem:[%s4046_s14 + $0xa0] sm:$0xff] %vm1811_vm6, %v1580_v51  ;;  %v1585_v55 = vmul.f32 %v3359_v8, %v1584_v49  ;;  %v1116_v54 = vadd.f32 %v4258_v50, %v1115_v53 }
 0x26a   : > { %v1586_v57 = vadd.f32 %v3359_v8, %v1585_v55  ;;  %v2953_v58 = vmul.f32 -1.442695, %v1116_v54 }
 0x26b   : > { %v3361_v59 = vpop.eup %3360 }
 0x26c   : > { %v3363_v61 = vpop.eup %3362  ;;  %v1590_v62 = vsel %vm1589_vm13, %v3359_v8, %v1586_v57  ;;  %v1598_v63 = vmul.f32 %v3361_v59, %v1257_v10  ;;  %3364 = vpow2.f32 %v2953_v58  ;;  %vm1603_vm15 = vweird.f32 %v3361_v59 }
 0x26d   : > { %v1595_v0 = vsel %vm1592_vm14, %v1594_v60, %v1590_v62  ;;  %v1258_v1 = vadd.f32 1.0, %v3363_v61  ;;  %vm1604_vm1 = vmor %vm1602_vm0, %vm1603_vm15 }
 0x26e   : > { %1833 = vst.msk [vmem:[%s4046_s14 + $0xa8] sm:$0xff] %vm1811_vm6, %v1595_v0  ;;  %v1599_v2 = vsub.f32 1.0, %v1598_v63 }
 0x26f   : > { %3366 = vrcp.f32 %v1258_v1  ;;  %v1623_v17 = vand.u32 2147483648, %v1258_v1  ;;  %v1621_v18 = vand.u32 2147483647, %v1258_v1  ;;  %vm1617_vm5 = vweird.f32 %v1258_v1 }
 0x270   : > { %v1600_v50 = vmul.f32 %v3361_v59, %v1599_v2 }
 0x271   : > { %v1624_v22 = vor.u32 1.1754944e-38, %v1623_v17  ;;  %vm1622_vm8 = vcmp.eq.f32.partialorder %v1621_v18, 8.507059e+37 }
 0x272   : > { %v3365_v5 = vpop.eup %3364  ;;  %v1601_v41 = vadd.f32 %v3361_v59, %v1600_v50 }
 0x273   : > { %v1259_v9 = vadd.f32 1.0, %v3365_v5 }
 0x274   : > { %v1605_v11 = vsel %vm1604_vm1, %v3361_v59, %v1601_v41 }
 0x275   : > { %v3367_v13 = vpop.eup %3366  ;;  %v1610_v14 = vsel %vm1607_vm3, %v1609_v7, %v1605_v11  ;;  %3368 = vrcp.f32 %v1259_v9  ;;  %v1638_v26 = vand.u32 2147483648, %v1259_v9  ;;  %v1636_v29 = vand.u32 2147483647, %v1259_v9 }
 0x276   : > { %1834 = vst.msk [vmem:[%s4046_s14 + $0xb0] sm:$0xff] %vm1811_vm6, %v1610_v14  ;;  %v1613_v15 = vmul.f32 %v3367_v13, %v1258_v1  ;;  %vm1618_vm4 = vweird.f32 %v3367_v13  ;;  %vm1632_vm10 = vweird.f32 %v1259_v9 }
 0x277   : > { %vm1619_vm7 = vmor %vm1617_vm5, %vm1618_vm4  ;;  %v1639_v31 = vor.u32 1.1754944e-38, %v1638_v26  ;;  %vm1637_vm12 = vcmp.eq.f32.partialorder %v1636_v29, 8.507059e+37 }
 0x278   : > { %v1614_v16 = vsub.f32 1.0, %v1613_v15 }
 0x27a   : > { %v1615_v6 = vmul.f32 %v3367_v13, %v1614_v16 }
 0x27b   : > { %v3369_v19 = vpop.eup %3368 }
 0x27c   : > { %v1616_v20 = vadd.f32 %v3367_v13, %v1615_v6  ;;  %v1628_v21 = vmul.f32 %v3369_v19, %v1259_v9  ;;  %vm1633_vm9 = vweird.f32 %v3369_v19 }
 0x27d   : > { %vm1634_vm11 = vmor %vm1632_vm10, %vm1633_vm9 }
 0x27e   : > { %v1620_v23 = vsel %vm1619_vm7, %v3367_v13, %v1616_v20  ;;  %v1629_v24 = vsub.f32 1.0, %v1628_v21 }
 0x27f   : > { %v1625_v25 = vsel %vm1622_vm8, %v1624_v22, %v1620_v23 }
 0x280   : > { %1835 = vst.msk [vmem:[%s4046_s14 + $0xb8] sm:$0xff] %vm1811_vm6, %v1625_v25  ;;  %v1630_v28 = vmul.f32 %v3369_v19, %v1629_v24 }
 0x282   : > { %v1631_v30 = vadd.f32 %v3369_v19, %v1630_v28  ;;  %1858 = sbr.rel (!%p3662_p4) target bundleno = 711 (0x2c7), region = 52 }
 0x284   : > { %v1635_v32 = vsel %vm1634_vm11, %v3369_v19, %v1631_v30 }
 0x285   : > { %v1640_v33 = vsel %vm1637_vm12, %v1639_v31, %v1635_v32 }
 0x286   : > { %1836 = vst.msk [vmem:[%s4046_s14 + $0xc0] sm:$0xff] %vm1811_vm6, %v1640_v33 }
 0x287   : > { %s4880_s19 = smov (!%p1861_p8, %s1860_s19), 32 }
 0x288   : > { %s2965_s25 = sshll.u32 %s4880_s19, 3 }
 0x289   : > { %p2968_p9 = scmp.eq.s32.totalorder %s2965_s25, 0 }
 0x28a   : > { %s4427_s26 = sshrl.u32 (!%p2968_p9), %s4880_s19, 5 }
 0x28b   : > { %1869 = sbr.rel (%p2968_p9) target bundleno = 711 (0x2c7), region = 56  ;;  %p2969_p10 = scmp.le.s32.totalorder (!%p2968_p9), %s4427_s26, 0 }
 0x290   : > { %2700 = sbr.rel (%p2969_p10) target bundleno = 694 (0x2b6), region = 276  ;;  %s4861_s27 = smov (!%p2969_p10), %s4421_s24 }
 0x291   : > { %s4862_s29 = smov (!%p2969_p10), %s3759_s30  ;;  %s4436_s11 = smov (!%p2969_p10), 0  }
 0x292   : > { %s4438_s15 = smov (!%p2969_p10), 0  }
 0x295 LB: >> { %v1994_v35 = vld [vmem:[%s3497_s29] sm:$0xff]  ;;  %v1996_v12 = vld [vmem:[%s3497_s29 + $0x8] sm:$0xff]  ;;  %v1998_v36 = vld [vmem:[%s3497_s29 + $0x10] sm:$0xff]  ;;  %s2058_s18 = sadd.s32 1, %s3501_s11  ;;  %s1988_s15 = sadd.s32 1, %s3505_s15   ;;  %s3505_s15 = sphi %s4438_s15, %s1988_s15   ;;  %s3501_s11 = sphi %s4436_s11, %s4865_s11   ;;  %s3497_s29 = sphi %s4862_s29, %s4864_s29   ;;  %s3493_s27 = sphi %s4861_s27, %s4863_s27  }
 0x296   : >> { %1995 = vst [vmem:[%s3493_s27] sm:$0xff] %v1994_v35  ;;  %v2000_v37 = vld [vmem:[%s3497_s29 + $0x18] sm:$0xff]  ;;  %p2059_p11 = scmp.ge.s32.totalorder %s2058_s18, %s4427_s26  ;;  %v2002_v38 = vld [vmem:[%s3497_s29 + $0x20] sm:$0xff]  ;;  %v2004_v27 = vld [vmem:[%s3497_s29 + $0x28] sm:$0xff]  ;;  %p1987_p12 = scmp.ge.s32.totalorder %s1988_s15, %s4427_s26 }
 0x297   : >> { %1997 = vst [vmem:[%s3493_s27 + $0x8] sm:$0xff] %v1996_v12  ;;  %v2006_v39 = vld [vmem:[%s3497_s29 + $0x30] sm:$0xff]  ;;  %v2008_v40 = vld [vmem:[%s3497_s29 + $0x38] sm:$0xff]  ;;  %v2010_v42 = vld [vmem:[%s3497_s29 + $0x40] sm:$0xff] }
 0x298   : >> { %1999 = vst [vmem:[%s3493_s27 + $0x10] sm:$0xff] %v1998_v36  ;;  %s4882_s18 = smov (%p2059_p11, %s2058_s18), 0  ;;  %v2012_v43 = vld [vmem:[%s3497_s29 + $0x48] sm:$0xff]  ;;  %v2014_v8 = vld [vmem:[%s3497_s29 + $0x50] sm:$0xff]  ;;  %v2016_v10 = vld [vmem:[%s3497_s29 + $0x58] sm:$0xff] }
 0x299   : >> { %2001 = vst [vmem:[%s3493_s27 + $0x18] sm:$0xff] %v2000_v37  ;;  %s2970_s21 = sshll.u32 %s4882_s18, 8  ;;  %v2018_v34 = vld [vmem:[%s3497_s29 + $0x60] sm:$0xff]  ;;  %v2020_v44 = vld [vmem:[%s3497_s29 + $0x68] sm:$0xff]  ;;  %v2022_v45 = vld [vmem:[%s3497_s29 + $0x70] sm:$0xff]  ;;  %s4865_s11 = smov %s4882_s18 }
 0x29a   : >> { %2003 = vst [vmem:[%s3493_s27 + $0x20] sm:$0xff] %v2002_v38  ;;  %s4470_s22 = scalar_lea.vmem %s3759_s30, %s2970_s21 [#allocation2]   ;;  %s4473_s23 = scalar_lea.vmem %s4421_s24, %s2970_s21   ;;  %v2024_v46 = vld [vmem:[%s3497_s29 + $0x78] sm:$0xff]  ;;  %v2026_v47 = vld [vmem:[%s3497_s29 + $0x80] sm:$0xff]  ;;  %v2028_v48 = vld [vmem:[%s3497_s29 + $0x88] sm:$0xff] }
 0x29b   : >> { %2005 = vst [vmem:[%s3493_s27 + $0x28] sm:$0xff] %v2004_v27  ;;  %v2030_v49 = vld [vmem:[%s3497_s29 + $0x90] sm:$0xff]  ;;  %v2032_v51 = vld [vmem:[%s3497_s29 + $0x98] sm:$0xff]  ;;  %v2034_v52 = vld [vmem:[%s3497_s29 + $0xa0] sm:$0xff] }
 0x29c   : >> { %2007 = vst [vmem:[%s3493_s27 + $0x30] sm:$0xff] %v2006_v39  ;;  %v2036_v53 = vld [vmem:[%s3497_s29 + $0xa8] sm:$0xff]  ;;  %v2038_v55 = vld [vmem:[%s3497_s29 + $0xb0] sm:$0xff]  ;;  %v2040_v56 = vld [vmem:[%s3497_s29 + $0xb8] sm:$0xff] }
 0x29d   : >> { %2009 = vst [vmem:[%s3493_s27 + $0x38] sm:$0xff] %v2008_v40  ;;  %v2042_v54 = vld [vmem:[%s3497_s29 + $0xc0] sm:$0xff]  ;;  %v2044_v57 = vld [vmem:[%s3497_s29 + $0xc8] sm:$0xff]  ;;  %v2046_v58 = vld [vmem:[%s3497_s29 + $0xd0] sm:$0xff] }
 0x29e   : >> { %2011 = vst [vmem:[%s3493_s27 + $0x40] sm:$0xff] %v2010_v42  ;;  %v2048_v59 = vld [vmem:[%s3497_s29 + $0xd8] sm:$0xff]  ;;  %v2050_v60 = vld [vmem:[%s3497_s29 + $0xe0] sm:$0xff]  ;;  %v2052_v61 = vld [vmem:[%s3497_s29 + $0xe8] sm:$0xff] }
 0x29f   : >> { %2013 = vst [vmem:[%s3493_s27 + $0x48] sm:$0xff] %v2012_v43  ;;  %v2054_v62 = vld [vmem:[%s3497_s29 + $0xf0] sm:$0xff]  ;;  %v2056_v63 = vld [vmem:[%s3497_s29 + $0xf8] sm:$0xff]  ;;  %s4864_s29 = smov %s4470_s22 }
 0x2a0   : >> { %2015 = vst [vmem:[%s3493_s27 + $0x50] sm:$0xff] %v2014_v8 }
 0x2a1   : >> { %2017 = vst [vmem:[%s3493_s27 + $0x58] sm:$0xff] %v2016_v10 }
 0x2a2   : >> { %2019 = vst [vmem:[%s3493_s27 + $0x60] sm:$0xff] %v2018_v34 }
 0x2a3   : >> { %2021 = vst [vmem:[%s3493_s27 + $0x68] sm:$0xff] %v2020_v44 }
 0x2a4   : >> { %2023 = vst [vmem:[%s3493_s27 + $0x70] sm:$0xff] %v2022_v45 }
 0x2a5   : >> { %2025 = vst [vmem:[%s3493_s27 + $0x78] sm:$0xff] %v2024_v46 }
 0x2a6   : >> { %2027 = vst [vmem:[%s3493_s27 + $0x80] sm:$0xff] %v2026_v47 }
 0x2a7   : >> { %2029 = vst [vmem:[%s3493_s27 + $0x88] sm:$0xff] %v2028_v48 }
 0x2a8   : >> { %2031 = vst [vmem:[%s3493_s27 + $0x90] sm:$0xff] %v2030_v49 }
 0x2a9   : >> { %2033 = vst [vmem:[%s3493_s27 + $0x98] sm:$0xff] %v2032_v51 }
 0x2aa   : >> { %2035 = vst [vmem:[%s3493_s27 + $0xa0] sm:$0xff] %v2034_v52 }
 0x2ab   : >> { %2037 = vst [vmem:[%s3493_s27 + $0xa8] sm:$0xff] %v2036_v53 }
 0x2ac   : >> { %2039 = vst [vmem:[%s3493_s27 + $0xb0] sm:$0xff] %v2038_v55 }
 0x2ad   : >> { %2041 = vst [vmem:[%s3493_s27 + $0xb8] sm:$0xff] %v2040_v56 }
 0x2ae   : >> { %2043 = vst [vmem:[%s3493_s27 + $0xc0] sm:$0xff] %v2042_v54 }
 0x2af   : >> { %2045 = vst [vmem:[%s3493_s27 + $0xc8] sm:$0xff] %v2044_v57 }
 0x2b0   : >> { %2047 = vst [vmem:[%s3493_s27 + $0xd0] sm:$0xff] %v2046_v58 }
 0x2b1   : >> { %2049 = vst [vmem:[%s3493_s27 + $0xd8] sm:$0xff] %v2048_v59  ;;  %1990 = sbr.rel (!%p1987_p12) target bundleno = 661 (0x295), region = 282 }
 0x2b2   : >> { %2051 = vst [vmem:[%s3493_s27 + $0xe0] sm:$0xff] %v2050_v60 }
 0x2b3   : >> { %2053 = vst [vmem:[%s3493_s27 + $0xe8] sm:$0xff] %v2052_v61 }
 0x2b4   : >> { %2055 = vst [vmem:[%s3493_s27 + $0xf0] sm:$0xff] %v2054_v62 }
 0x2b5   : >> { %2057 = vst [vmem:[%s3493_s27 + $0xf8] sm:$0xff] %v2056_v63  ;;  %s4863_s27 = smov %s4473_s23 }
 0x2b6 PF: > { %s4538_s25 = sand.u32 31, %s4880_s19   ;;  %s3009_s21 = sshll.u32 %s4427_s26, 8 }
 0x2b7   : > { %s2069_s0 = scalar_lea.vmem %s3759_s30, %s3009_s21 [#allocation2]   ;;  %s2071_s1 = scalar_lea.vmem %s4421_s24, %s3009_s21  }
 0x2b8   : > { %p2975_p13 = scmp.le.s32.totalorder %s4538_s25, 0 }
 0x2b9   : > { %s3507_s23 = smov (!%p2975_p13), %s2071_s1   ;;  %s3511_s22 = smov (!%p2975_p13), %s2069_s0  }
 0x2ba   : > { %2714 = sbr.rel (%p2975_p13) target bundleno = 711 (0x2c7), region = 287  ;;  %s3515_s2 = smov (!%p2975_p13), 0  }
 0x2bb   : > { %s3519_s18 = smov (!%p2975_p13), 0  }
 0x2bf LB: >> { %v2081_v0 = vld [vmem:[%s3513_s22] sm:$0xff]  ;;  %s2083_s19 = sadd.s32 1, %s3517_s2  ;;  %s2075_s18 = sadd.s32 1, %s3521_s18   ;;  %s3521_s18 = sphi %s3519_s18, %s2075_s18   ;;  %s3517_s2 = sphi %s3515_s2, %s3516_s2   ;;  %s3513_s22 = sphi %s3511_s22, %s2088_s22   ;;  %s3509_s23 = sphi %s3507_s23, %s2089_s23  }
 0x2c0   : >> { %2082 = vst [vmem:[%s3509_s23] sm:$0xff] %v2081_v0  ;;  %p2084_p0 = scmp.ge.s32.totalorder %s2083_s19, %s4538_s25  ;;  %p2074_p1 = scmp.ge.s32.totalorder %s2075_s18, %s4538_s25 }
 0x2c2   : >> { %s4884_s19 = smov (%p2084_p0, %s2083_s19), 0  ;;  %2077 = sbr.rel (!%p2074_p1) target bundleno = 703 (0x2bf), region = 293 }
 0x2c3   : >> { %s2976_s30 = sshll.u32 %s4884_s19, 3  ;;  %s3516_s2 = smov %s4884_s19  }
 0x2c4   : >> { %s2088_s22 = scalar_lea.vmem %s2069_s0, %s2976_s30 [#allocation2]   ;;  %s2089_s23 = scalar_lea.vmem %s2071_s1, %s2976_s30  }
 0x2c7 PF: > { %2095 = sbr.rel (!%p3662_p4) target bundleno = 780 (0x30c), region = 104  ;;  %s2097_s2 = ssub.s32 (%p3662_p4), 42, %s3670_s20 }
 0x2c8   : > { %s3011_s24 = sshll.u32 (%p3662_p4), %s3650_s12, 8  ;;  %p2098_p2 = scmp.lt.s32.totalorder (%p3662_p4), %s2097_s2, 32 }
 0x2c9   : > { %s4553_s29 = scalar_lea.vmem (%p3662_p4), %s4828_s8, %s3011_s24  }
 0x2cc   : > { %s4886_s2 = smov (!%p2098_p2, %s2097_s2), 32 }
 0x2cd   : > { %s2979_s11 = sshll.u32 %s4886_s2, 3 }
 0x2ce   : > { %p2982_p3 = scmp.eq.s32.totalorder %s2979_s11, 0 }
 0x2cf   : > { %s4559_s0 = sshrl.u32 (!%p2982_p3), %s4886_s2, 5 }
 0x2d0   : > { %2106 = sbr.rel (%p2982_p3) target bundleno = 780 (0x30c), region = 108  ;;  %p2983_p5 = scmp.le.s32.totalorder (!%p2982_p3), %s4559_s0, 0 }
 0x2d5   : > { %2728 = sbr.rel (%p2983_p5) target bundleno = 763 (0x2fb), region = 298  ;;  %s4866_s1 = smov (!%p2983_p5), %s4553_s29 }
 0x2d6   : > { %s4867_s15 = smov (!%p2983_p5), %s3885_s28  ;;  %s4568_s25 = smov (!%p2983_p5), 0  }
 0x2d7   : > { %s4570_s21 = smov (!%p2983_p5), 0  }
 0x2da LB: >> { %v2231_v1 = vld [vmem:[%s3529_s15] sm:$0xff]  ;;  %v2233_v2 = vld [vmem:[%s3529_s15 + $0x8] sm:$0xff]  ;;  %v2235_v3 = vld [vmem:[%s3529_s15 + $0x10] sm:$0xff]  ;;  %s2295_s23 = sadd.s32 1, %s3533_s25  ;;  %s2225_s21 = sadd.s32 1, %s3537_s21   ;;  %s3537_s21 = sphi %s4570_s21, %s2225_s21   ;;  %s3533_s25 = sphi %s4568_s25, %s4870_s25   ;;  %s3529_s15 = sphi %s4867_s15, %s4869_s15   ;;  %s3525_s1 = sphi %s4866_s1, %s4868_s1  }
 0x2db   : >> { %2232 = vst [vmem:[%s3525_s1] sm:$0xff] %v2231_v1  ;;  %v2237_v50 = vld [vmem:[%s3529_s15 + $0x18] sm:$0xff]  ;;  %p2296_p6 = scmp.ge.s32.totalorder %s2295_s23, %s4559_s0  ;;  %v2239_v4 = vld [vmem:[%s3529_s15 + $0x20] sm:$0xff]  ;;  %v2241_v5 = vld [vmem:[%s3529_s15 + $0x28] sm:$0xff]  ;;  %p2224_p7 = scmp.ge.s32.totalorder %s2225_s21, %s4559_s0 }
 0x2dc   : >> { %2234 = vst [vmem:[%s3525_s1 + $0x8] sm:$0xff] %v2233_v2  ;;  %v2243_v41 = vld [vmem:[%s3529_s15 + $0x30] sm:$0xff]  ;;  %v2245_v7 = vld [vmem:[%s3529_s15 + $0x38] sm:$0xff]  ;;  %v2247_v9 = vld [vmem:[%s3529_s15 + $0x40] sm:$0xff] }
 0x2dd   : >> { %2236 = vst [vmem:[%s3525_s1 + $0x10] sm:$0xff] %v2235_v3  ;;  %s4888_s23 = smov (%p2296_p6, %s2295_s23), 0  ;;  %v2249_v11 = vld [vmem:[%s3529_s15 + $0x48] sm:$0xff]  ;;  %v2251_v13 = vld [vmem:[%s3529_s15 + $0x50] sm:$0xff]  ;;  %v2253_v14 = vld [vmem:[%s3529_s15 + $0x58] sm:$0xff] }
 0x2de   : >> { %2238 = vst [vmem:[%s3525_s1 + $0x18] sm:$0xff] %v2237_v50  ;;  %s2984_s22 = sshll.u32 %s4888_s23, 8  ;;  %v2255_v15 = vld [vmem:[%s3529_s15 + $0x60] sm:$0xff]  ;;  %v2257_v16 = vld [vmem:[%s3529_s15 + $0x68] sm:$0xff]  ;;  %v2259_v17 = vld [vmem:[%s3529_s15 + $0x70] sm:$0xff]  ;;  %s4870_s25 = smov %s4888_s23 }
 0x2df   : >> { %2240 = vst [vmem:[%s3525_s1 + $0x20] sm:$0xff] %v2239_v4  ;;  %s4602_s18 = scalar_lea.vmem %s3885_s28, %s2984_s22 [#allocation3]   ;;  %s4605_s19 = scalar_lea.vmem %s4553_s29, %s2984_s22   ;;  %v2261_v6 = vld [vmem:[%s3529_s15 + $0x78] sm:$0xff]  ;;  %v2263_v18 = vld [vmem:[%s3529_s15 + $0x80] sm:$0xff]  ;;  %v2265_v19 = vld [vmem:[%s3529_s15 + $0x88] sm:$0xff] }
 0x2e0   : >> { %2242 = vst [vmem:[%s3525_s1 + $0x28] sm:$0xff] %v2241_v5  ;;  %v2267_v20 = vld [vmem:[%s3529_s15 + $0x90] sm:$0xff]  ;;  %v2269_v21 = vld [vmem:[%s3529_s15 + $0x98] sm:$0xff]  ;;  %v2271_v22 = vld [vmem:[%s3529_s15 + $0xa0] sm:$0xff] }
 0x2e1   : >> { %2244 = vst [vmem:[%s3525_s1 + $0x30] sm:$0xff] %v2243_v41  ;;  %v2273_v23 = vld [vmem:[%s3529_s15 + $0xa8] sm:$0xff]  ;;  %v2275_v24 = vld [vmem:[%s3529_s15 + $0xb0] sm:$0xff]  ;;  %v2277_v25 = vld [vmem:[%s3529_s15 + $0xb8] sm:$0xff] }
 0x2e2   : >> { %2246 = vst [vmem:[%s3525_s1 + $0x38] sm:$0xff] %v2245_v7  ;;  %v2279_v26 = vld [vmem:[%s3529_s15 + $0xc0] sm:$0xff]  ;;  %v2281_v28 = vld [vmem:[%s3529_s15 + $0xc8] sm:$0xff]  ;;  %v2283_v29 = vld [vmem:[%s3529_s15 + $0xd0] sm:$0xff] }
 0x2e3   : >> { %2248 = vst [vmem:[%s3525_s1 + $0x40] sm:$0xff] %v2247_v9  ;;  %v2285_v30 = vld [vmem:[%s3529_s15 + $0xd8] sm:$0xff]  ;;  %v2287_v31 = vld [vmem:[%s3529_s15 + $0xe0] sm:$0xff]  ;;  %v2289_v32 = vld [vmem:[%s3529_s15 + $0xe8] sm:$0xff] }
 0x2e4   : >> { %2250 = vst [vmem:[%s3525_s1 + $0x48] sm:$0xff] %v2249_v11  ;;  %v2291_v33 = vld [vmem:[%s3529_s15 + $0xf0] sm:$0xff]  ;;  %v2293_v35 = vld [vmem:[%s3529_s15 + $0xf8] sm:$0xff]  ;;  %s4869_s15 = smov %s4602_s18 }
 0x2e5   : >> { %2252 = vst [vmem:[%s3525_s1 + $0x50] sm:$0xff] %v2251_v13 }
 0x2e6   : >> { %2254 = vst [vmem:[%s3525_s1 + $0x58] sm:$0xff] %v2253_v14 }
 0x2e7   : >> { %2256 = vst [vmem:[%s3525_s1 + $0x60] sm:$0xff] %v2255_v15 }
 0x2e8   : >> { %2258 = vst [vmem:[%s3525_s1 + $0x68] sm:$0xff] %v2257_v16 }
 0x2e9   : >> { %2260 = vst [vmem:[%s3525_s1 + $0x70] sm:$0xff] %v2259_v17 }
 0x2ea   : >> { %2262 = vst [vmem:[%s3525_s1 + $0x78] sm:$0xff] %v2261_v6 }
 0x2eb   : >> { %2264 = vst [vmem:[%s3525_s1 + $0x80] sm:$0xff] %v2263_v18 }
 0x2ec   : >> { %2266 = vst [vmem:[%s3525_s1 + $0x88] sm:$0xff] %v2265_v19 }
 0x2ed   : >> { %2268 = vst [vmem:[%s3525_s1 + $0x90] sm:$0xff] %v2267_v20 }
 0x2ee   : >> { %2270 = vst [vmem:[%s3525_s1 + $0x98] sm:$0xff] %v2269_v21 }
 0x2ef   : >> { %2272 = vst [vmem:[%s3525_s1 + $0xa0] sm:$0xff] %v2271_v22 }
 0x2f0   : >> { %2274 = vst [vmem:[%s3525_s1 + $0xa8] sm:$0xff] %v2273_v23 }
 0x2f1   : >> { %2276 = vst [vmem:[%s3525_s1 + $0xb0] sm:$0xff] %v2275_v24 }
 0x2f2   : >> { %2278 = vst [vmem:[%s3525_s1 + $0xb8] sm:$0xff] %v2277_v25 }
 0x2f3   : >> { %2280 = vst [vmem:[%s3525_s1 + $0xc0] sm:$0xff] %v2279_v26 }
 0x2f4   : >> { %2282 = vst [vmem:[%s3525_s1 + $0xc8] sm:$0xff] %v2281_v28 }
 0x2f5   : >> { %2284 = vst [vmem:[%s3525_s1 + $0xd0] sm:$0xff] %v2283_v29 }
 0x2f6   : >> { %2286 = vst [vmem:[%s3525_s1 + $0xd8] sm:$0xff] %v2285_v30  ;;  %2227 = sbr.rel (!%p2224_p7) target bundleno = 730 (0x2da), region = 304 }
 0x2f7   : >> { %2288 = vst [vmem:[%s3525_s1 + $0xe0] sm:$0xff] %v2287_v31 }
 0x2f8   : >> { %2290 = vst [vmem:[%s3525_s1 + $0xe8] sm:$0xff] %v2289_v32 }
 0x2f9   : >> { %2292 = vst [vmem:[%s3525_s1 + $0xf0] sm:$0xff] %v2291_v33 }
 0x2fa   : >> { %2294 = vst [vmem:[%s3525_s1 + $0xf8] sm:$0xff] %v2293_v35  ;;  %s4868_s1 = smov %s4605_s19 }
 0x2fb PF: > { %s4670_s30 = sand.u32 31, %s4886_s2   ;;  %s3012_s24 = sshll.u32 %s4559_s0, 8 }
 0x2fc   : > { %s2306_s26 = scalar_lea.vmem %s3885_s28, %s3012_s24 [#allocation3]   ;;  %s2308_s27 = scalar_lea.vmem %s4553_s29, %s3012_s24  }
 0x2fd   : > { %p2989_p8 = scmp.le.s32.totalorder %s4670_s30, 0 }
 0x2fe   : > { %s3539_s11 = smov (!%p2989_p8), %s2308_s27   ;;  %s3543_s22 = smov (!%p2989_p8), %s2306_s26  }
 0x2ff   : > { %2742 = sbr.rel (%p2989_p8) target bundleno = 780 (0x30c), region = 309  ;;  %s3547_s18 = smov (!%p2989_p8), 0  }
 0x300   : > { %s3551_s23 = smov (!%p2989_p8), 0  }
 0x304 LB: >> { %v2318_v12 = vld [vmem:[%s3545_s22] sm:$0xff]  ;;  %s2320_s2 = sadd.s32 1, %s3549_s18  ;;  %s2312_s23 = sadd.s32 1, %s3553_s23   ;;  %s3553_s23 = sphi %s3551_s23, %s2312_s23   ;;  %s3549_s18 = sphi %s3547_s18, %s3548_s18   ;;  %s3545_s22 = sphi %s3543_s22, %s2325_s22   ;;  %s3541_s11 = sphi %s3539_s11, %s2326_s11  }
 0x305   : >> { %2319 = vst [vmem:[%s3541_s11] sm:$0xff] %v2318_v12  ;;  %p2321_p9 = scmp.ge.s32.totalorder %s2320_s2, %s4670_s30  ;;  %p2311_p10 = scmp.ge.s32.totalorder %s2312_s23, %s4670_s30 }
 0x307   : >> { %s4890_s2 = smov (%p2321_p9, %s2320_s2), 0  ;;  %2314 = sbr.rel (!%p2311_p10) target bundleno = 772 (0x304), region = 315 }
 0x308   : >> { %s2990_s28 = sshll.u32 %s4890_s2, 3  ;;  %s3548_s18 = smov %s4890_s2  }
 0x309   : >> { %s2325_s22 = scalar_lea.vmem %s2306_s26, %s2990_s28 [#allocation3]   ;;  %s2326_s11 = scalar_lea.vmem %s2308_s27, %s2990_s28  }
 0x30c PF: > { %2332 = sbr.rel (!%p3662_p4) target bundleno = 849 (0x351), region = 156  ;;  %s2334_s29 = ssub.s32 (%p3662_p4), 42, %s3670_s20 }
 0x30d   : > { %s3014_s0 = sshll.u32 (%p3662_p4), %s3650_s12, 8  ;;  %p2335_p11 = scmp.lt.s32.totalorder (%p3662_p4), %s2334_s29, 32 }
 0x30e   : > { %s4685_s25 = scalar_lea.vmem (%p3662_p4), %s4829_s9, %s3014_s0  }
 0x311   : > { %s4892_s29 = smov (!%p2335_p11, %s2334_s29), 32 }
 0x312   : > { %s2993_s21 = sshll.u32 %s4892_s29, 3 }
 0x313   : > { %p2996_p12 = scmp.eq.s32.totalorder %s2993_s21, 0 }
 0x314   : > { %s4691_s19 = sshrl.u32 (!%p2996_p12), %s4892_s29, 5 }
 0x315   : > { %2343 = sbr.rel (%p2996_p12) target bundleno = 849 (0x351), region = 160  ;;  %p2997_p4 = scmp.le.s32.totalorder (!%p2996_p12), %s4691_s19, 0 }
 0x31a   : > { %2756 = sbr.rel (%p2997_p4) target bundleno = 832 (0x340), region = 320  ;;  %s4871_s12 = smov (!%p2997_p4), %s4685_s25 }
 0x31b   : > { %s4872_s17 = smov (!%p2997_p4), %s4046_s14  ;;  %s4700_s20 = smov (!%p2997_p4), 0  }
 0x31c   : > { %s4702_s30 = smov (!%p2997_p4), 0  }
 0x31f LB: >> { %v2468_v36 = vld [vmem:[%s3561_s17] sm:$0xff]  ;;  %v2470_v37 = vld [vmem:[%s3561_s17 + $0x8] sm:$0xff]  ;;  %v2472_v38 = vld [vmem:[%s3561_s17 + $0x10] sm:$0xff]  ;;  %s2532_s24 = sadd.s32 1, %s3565_s20  ;;  %s2462_s30 = sadd.s32 1, %s3569_s30   ;;  %s3569_s30 = sphi %s4702_s30, %s2462_s30   ;;  %s3565_s20 = sphi %s4700_s20, %s4875_s20   ;;  %s3561_s17 = sphi %s4872_s17, %s4874_s17   ;;  %s3557_s12 = sphi %s4871_s12, %s4873_s12  }
 0x320   : >> { %2469 = vst [vmem:[%s3557_s12] sm:$0xff] %v2468_v36  ;;  %v2474_v27 = vld [vmem:[%s3561_s17 + $0x18] sm:$0xff]  ;;  %p2533_p13 = scmp.ge.s32.totalorder %s2532_s24, %s4691_s19  ;;  %v2476_v39 = vld [vmem:[%s3561_s17 + $0x20] sm:$0xff]  ;;  %v2478_v40 = vld [vmem:[%s3561_s17 + $0x28] sm:$0xff]  ;;  %p2461_p0 = scmp.ge.s32.totalorder %s2462_s30, %s4691_s19 }
 0x321   : >> { %2471 = vst [vmem:[%s3557_s12 + $0x8] sm:$0xff] %v2470_v37  ;;  %v2480_v42 = vld [vmem:[%s3561_s17 + $0x30] sm:$0xff]  ;;  %v2482_v43 = vld [vmem:[%s3561_s17 + $0x38] sm:$0xff]  ;;  %v2484_v8 = vld [vmem:[%s3561_s17 + $0x40] sm:$0xff] }
 0x322   : >> { %2473 = vst [vmem:[%s3557_s12 + $0x10] sm:$0xff] %v2472_v38  ;;  %s4894_s24 = smov (%p2533_p13, %s2532_s24), 0  ;;  %v2486_v10 = vld [vmem:[%s3561_s17 + $0x48] sm:$0xff]  ;;  %v2488_v34 = vld [vmem:[%s3561_s17 + $0x50] sm:$0xff]  ;;  %v2490_v44 = vld [vmem:[%s3561_s17 + $0x58] sm:$0xff] }
 0x323   : >> { %2475 = vst [vmem:[%s3557_s12 + $0x18] sm:$0xff] %v2474_v27  ;;  %s2998_s26 = sshll.u32 %s4894_s24, 8  ;;  %v2492_v45 = vld [vmem:[%s3561_s17 + $0x60] sm:$0xff]  ;;  %v2494_v46 = vld [vmem:[%s3561_s17 + $0x68] sm:$0xff]  ;;  %v2496_v47 = vld [vmem:[%s3561_s17 + $0x70] sm:$0xff]  ;;  %s4875_s20 = smov %s4894_s24 }
 0x324   : >> { %2477 = vst [vmem:[%s3557_s12 + $0x20] sm:$0xff] %v2476_v39  ;;  %s4734_s27 = scalar_lea.vmem %s4046_s14, %s2998_s26 [#allocation4]   ;;  %s4737_s11 = scalar_lea.vmem %s4685_s25, %s2998_s26   ;;  %v2498_v48 = vld [vmem:[%s3561_s17 + $0x78] sm:$0xff]  ;;  %v2500_v49 = vld [vmem:[%s3561_s17 + $0x80] sm:$0xff]  ;;  %v2502_v51 = vld [vmem:[%s3561_s17 + $0x88] sm:$0xff] }
 0x325   : >> { %2479 = vst [vmem:[%s3557_s12 + $0x28] sm:$0xff] %v2478_v40  ;;  %v2504_v52 = vld [vmem:[%s3561_s17 + $0x90] sm:$0xff]  ;;  %v2506_v53 = vld [vmem:[%s3561_s17 + $0x98] sm:$0xff]  ;;  %v2508_v55 = vld [vmem:[%s3561_s17 + $0xa0] sm:$0xff] }
 0x326   : >> { %2481 = vst [vmem:[%s3557_s12 + $0x30] sm:$0xff] %v2480_v42  ;;  %v2510_v56 = vld [vmem:[%s3561_s17 + $0xa8] sm:$0xff]  ;;  %v2512_v54 = vld [vmem:[%s3561_s17 + $0xb0] sm:$0xff]  ;;  %v2514_v57 = vld [vmem:[%s3561_s17 + $0xb8] sm:$0xff] }
 0x327   : >> { %2483 = vst [vmem:[%s3557_s12 + $0x38] sm:$0xff] %v2482_v43  ;;  %v2516_v58 = vld [vmem:[%s3561_s17 + $0xc0] sm:$0xff]  ;;  %v2518_v59 = vld [vmem:[%s3561_s17 + $0xc8] sm:$0xff]  ;;  %v2520_v60 = vld [vmem:[%s3561_s17 + $0xd0] sm:$0xff] }
 0x328   : >> { %2485 = vst [vmem:[%s3557_s12 + $0x40] sm:$0xff] %v2484_v8  ;;  %v2522_v61 = vld [vmem:[%s3561_s17 + $0xd8] sm:$0xff]  ;;  %v2524_v62 = vld [vmem:[%s3561_s17 + $0xe0] sm:$0xff]  ;;  %v2526_v63 = vld [vmem:[%s3561_s17 + $0xe8] sm:$0xff] }
 0x329   : >> { %2487 = vst [vmem:[%s3557_s12 + $0x48] sm:$0xff] %v2486_v10  ;;  %v2528_v0 = vld [vmem:[%s3561_s17 + $0xf0] sm:$0xff]  ;;  %v2530_v1 = vld [vmem:[%s3561_s17 + $0xf8] sm:$0xff]  ;;  %s4874_s17 = smov %s4734_s27 }
 0x32a   : >> { %2489 = vst [vmem:[%s3557_s12 + $0x50] sm:$0xff] %v2488_v34 }
 0x32b   : >> { %2491 = vst [vmem:[%s3557_s12 + $0x58] sm:$0xff] %v2490_v44 }
 0x32c   : >> { %2493 = vst [vmem:[%s3557_s12 + $0x60] sm:$0xff] %v2492_v45 }
 0x32d   : >> { %2495 = vst [vmem:[%s3557_s12 + $0x68] sm:$0xff] %v2494_v46 }
 0x32e   : >> { %2497 = vst [vmem:[%s3557_s12 + $0x70] sm:$0xff] %v2496_v47 }
 0x32f   : >> { %2499 = vst [vmem:[%s3557_s12 + $0x78] sm:$0xff] %v2498_v48 }
 0x330   : >> { %2501 = vst [vmem:[%s3557_s12 + $0x80] sm:$0xff] %v2500_v49 }
 0x331   : >> { %2503 = vst [vmem:[%s3557_s12 + $0x88] sm:$0xff] %v2502_v51 }
 0x332   : >> { %2505 = vst [vmem:[%s3557_s12 + $0x90] sm:$0xff] %v2504_v52 }
 0x333   : >> { %2507 = vst [vmem:[%s3557_s12 + $0x98] sm:$0xff] %v2506_v53 }
 0x334   : >> { %2509 = vst [vmem:[%s3557_s12 + $0xa0] sm:$0xff] %v2508_v55 }
 0x335   : >> { %2511 = vst [vmem:[%s3557_s12 + $0xa8] sm:$0xff] %v2510_v56 }
 0x336   : >> { %2513 = vst [vmem:[%s3557_s12 + $0xb0] sm:$0xff] %v2512_v54 }
 0x337   : >> { %2515 = vst [vmem:[%s3557_s12 + $0xb8] sm:$0xff] %v2514_v57 }
 0x338   : >> { %2517 = vst [vmem:[%s3557_s12 + $0xc0] sm:$0xff] %v2516_v58 }
 0x339   : >> { %2519 = vst [vmem:[%s3557_s12 + $0xc8] sm:$0xff] %v2518_v59 }
 0x33a   : >> { %2521 = vst [vmem:[%s3557_s12 + $0xd0] sm:$0xff] %v2520_v60 }
 0x33b   : >> { %2523 = vst [vmem:[%s3557_s12 + $0xd8] sm:$0xff] %v2522_v61  ;;  %2464 = sbr.rel (!%p2461_p0) target bundleno = 799 (0x31f), region = 326 }
 0x33c   : >> { %2525 = vst [vmem:[%s3557_s12 + $0xe0] sm:$0xff] %v2524_v62 }
 0x33d   : >> { %2527 = vst [vmem:[%s3557_s12 + $0xe8] sm:$0xff] %v2526_v63 }
 0x33e   : >> { %2529 = vst [vmem:[%s3557_s12 + $0xf0] sm:$0xff] %v2528_v0 }
 0x33f   : >> { %2531 = vst [vmem:[%s3557_s12 + $0xf8] sm:$0xff] %v2530_v1  ;;  %s4873_s12 = smov %s4737_s11 }
 0x340 PF: > { %s4802_s22 = sand.u32 31, %s4892_s29   ;;  %s3015_s18 = sshll.u32 %s4691_s19, 8 }
 0x341   : > { %s2543_s23 = scalar_lea.vmem %s4046_s14, %s3015_s18 [#allocation4]   ;;  %s2545_s2 = scalar_lea.vmem %s4685_s25, %s3015_s18  }
 0x342   : > { %p3003_p1 = scmp.le.s32.totalorder %s4802_s22, 0 }
 0x343   : > { %s3571_s28 = smov (!%p3003_p1), %s2545_s2   ;;  %s3575_s0 = smov (!%p3003_p1), %s2543_s23  }
 0x344   : > { %2770 = sbr.rel (%p3003_p1) target bundleno = 849 (0x351), region = 331  ;;  %s3579_s1 = smov (!%p3003_p1), 0  }
 0x345   : > { %s3583_s15 = smov (!%p3003_p1), 0  }
 0x349 LB: >> { %v2555_v2 = vld [vmem:[%s3577_s0] sm:$0xff]  ;;  %s2557_s29 = sadd.s32 1, %s3581_s1  ;;  %s2549_s15 = sadd.s32 1, %s3585_s15   ;;  %s3585_s15 = sphi %s3583_s15, %s2549_s15   ;;  %s3581_s1 = sphi %s3579_s1, %s3580_s1   ;;  %s3577_s0 = sphi %s3575_s0, %s2562_s0   ;;  %s3573_s28 = sphi %s3571_s28, %s2563_s28  }
 0x34a   : >> { %2556 = vst [vmem:[%s3573_s28] sm:$0xff] %v2555_v2  ;;  %p2558_p2 = scmp.ge.s32.totalorder %s2557_s29, %s4802_s22  ;;  %p2548_p3 = scmp.ge.s32.totalorder %s2549_s15, %s4802_s22 }
 0x34c   : >> { %s4896_s29 = smov (%p2558_p2, %s2557_s29), 0  ;;  %2551 = sbr.rel (!%p2548_p3) target bundleno = 841 (0x349), region = 337 }
 0x34d   : >> { %s3004_s14 = sshll.u32 %s4896_s29, 3  ;;  %s3580_s1 = smov %s4896_s29  }
 0x34e   : >> { %s2562_s0 = scalar_lea.vmem %s2543_s23, %s3004_s14 [#allocation4]   ;;  %s2563_s28 = scalar_lea.vmem %s2545_s2, %s3004_s14  }
 0x351 PF: > { %p17_p5 = scmp.ge.s32.totalorder %s3652_s13, 4   ;;  %s4876_s30 = smov %s3485_s10 }
 0x352   : > { %s4877_s10 = smov %s3660_s16  ;;  %s4878_s11 = smov %s3652_s13 }
 0x353   :  { %19 = sbr.rel (!%p17_p5) target bundleno = 6 (0x6), region = 348 }

</bundles_post_ra>
